<compile_context>
chip_gen: v7x
topology: tpu7x:2x2x1
jax: 0.10.0
libtpu: 0.0.40
codegen_flags: <defaults>
</compile_context>

<pallas_src>
import jax
import jax.numpy as jnp
from jax.experimental import pallas as pl
from jax.experimental.pallas import tpu as pltpu


def _make_residual_kernel(N, H, W, Cin, Cout, use_1x1conv, eps):
    NH = N * H
    NHW = N * H * W
    WCi = W * Cin
    WCo = W * Cout
    HIGH = jax.lax.Precision.HIGHEST

    def shifted_lhs(x2d, m_top, m_bot):
        # (NH, C) f32 -> (NH, 3C) bf16: lane-concat of the [h-1, h, h+1] row slabs.
        # Vertical shifts are XLU rolls on the flat slab; the per-image H boundary
        # (conv zero padding) is one broadcast multiply per shifted slab, so there
        # is no padded-H temporary and no H-direction slice/concat slab copies.
        up = pltpu.roll(x2d, shift=1, axis=0) * m_top        # row h-1 (zeroed at h == 0)
        dn = pltpu.roll(x2d, shift=NH - 1, axis=0) * m_bot   # row h+1 (zeroed at h == H-1)
        return jnp.concatenate([up, x2d, dn], axis=1).astype(jnp.bfloat16)

    def batchnorm(y, gamma_ref, beta_ref, sel2_ref, selt_ref, relu):
        # Training-mode BN (biased variance), single pass.
        #   row reduce   : exact f32 XLU reduction of [y | y*y]      -> (1, 2*WCo)
        #   channel reduce: (1,2*WCo) @ block-diag selector (HIGHEST) -> (1, 2*Cout)
        #   expansion    : stacked (2,Cout) @ selT (HIGHEST)          -> (2, WCo)
        yy = jnp.concatenate([y, y * y], axis=1)                     # (NH, 2*WCo)
        s_q = jnp.sum(yy, axis=0, keepdims=True)                     # (1, 2*WCo) exact f32
        sq_c = jnp.dot(s_q, sel2_ref[...], precision=HIGH,
                       preferred_element_type=jnp.float32)           # (1, 2*Cout)
        inv_n = 1.0 / float(NHW)
        mean_c = sq_c[:, :Cout] * inv_n
        var_c = sq_c[:, Cout:] * inv_n - mean_c * mean_c             # biased variance
        scale_c = gamma_ref[...] * jax.lax.rsqrt(var_c + eps)
        shift_c = beta_ref[...] - mean_c * scale_c
        ss = jnp.concatenate([scale_c, shift_c], axis=0)             # (2, Cout)
        ss_l = jnp.dot(ss, selt_ref[...], precision=HIGH,
                       preferred_element_type=jnp.float32)           # (2, WCo)
        out = y * ss_l[0:1, :] + ss_l[1:2, :]                        # one FMA over the slab
        if relu:
            out = jnp.maximum(out, 0.0)
        return out

    def kernel(*refs):
        if use_1x1conv:
            (x_ref, mt_ref, mb_ref, wt1_ref, g1_ref, be1_ref, wt2_ref, g2_ref,
             be2_ref, sel2_ref, selt_ref, b3_ref, out_ref) = refs
        else:
            (x_ref, mt_ref, mb_ref, wt1_ref, g1_ref, be1_ref, wt2_ref, g2_ref,
             be2_ref, sel2_ref, selt_ref, out_ref) = refs

        x2d = x_ref[...]                          # (NH, WCi) f32, lanes = (w, cin)
        m_top = mt_ref[...]                       # (NH, 1) f32, 0 where h == 0
        m_bot = mb_ref[...]                       # (NH, 1) f32, 0 where h == H-1

        # conv1 (3x3) as a single MXU dot; when use_1x1conv the 1x1 shortcut conv
        # is fused into the same dot as extra output lanes (output width 2*WCo).
        lhs1 = shifted_lhs(x2d, m_top, m_bot)                         # (NH, 3*WCi) bf16
        y1 = jnp.dot(lhs1, wt1_ref[...], preferred_element_type=jnp.float32)
        if use_1x1conv:
            y = y1[:, :WCo]
            res = y1[:, WCo:] + b3_ref[...]
        else:
            y = y1
            res = x2d                                                 # identity (Cin == Cout)

        # bn1 + relu   (conv biases b1/b2 cancel exactly under training-mode BN)
        y = batchnorm(y, g1_ref, be1_ref, sel2_ref, selt_ref, relu=True)

        # conv2 (3x3, single dot) -> bn2
        lhs2 = shifted_lhs(y, m_top, m_bot)                           # (NH, 3*WCo) bf16
        y = jnp.dot(lhs2, wt2_ref[...], preferred_element_type=jnp.float32)
        y = batchnorm(y, g2_ref, be2_ref, sel2_ref, selt_ref, relu=False)

        # residual add + relu; lane-dense (NH, W*Cout) unmasked store
        out_ref[...] = jnp.maximum(y + res, 0.0).astype(out_ref.dtype)

    return kernel


def _stacked_conv_weights(w_hwio, W):
    """(3,3,Ci,Co) conv weights -> (3*W*Ci, W*Co) stacked shifted block-diagonal weight.

    Block kh (rows [kh*W*Ci : (kh+1)*W*Ci]) multiplies the x[h + kh - 1] slab;
    within a block: [wi*Ci+ci, wo*Co+co] = w[kh, wi-wo+1, ci, co] (zero if |wi-wo|>1),
    so horizontal taps + width zero-padding are folded into the single matmul.
    """
    w = w_hwio.astype(jnp.float32)
    Ci, Co = w.shape[2], w.shape[3]
    taps = []
    for kh in range(3):
        m = jnp.zeros((W * Ci, W * Co), jnp.float32)
        for kw in range(3):
            dw = kw - 1
            shift = jnp.eye(W, k=-dw, dtype=jnp.float32)   # 1 at (wi, wo) with wi = wo + dw
            m = m + jnp.kron(shift, w[kh, kw])
        taps.append(m)
    return jnp.concatenate(taps, axis=0)                   # (3*W*Ci, W*Co)


def make_residual_forward(params, x_shape_nchw, *, use_1x1conv, stride=1, eps=1e-5):
    """Builds a jitted Pallas forward pass of the PyTorch `Residual` module
    (training-mode BN).  All shape-dependent constants (stacked conv weights,
    BN selectors, boundary masks) are precomputed ONCE here, outside the
    per-call path."""
    # TODO(synk): stride > 1 (spatial downsampling) not implemented; only stride=1.
    assert stride == 1, "only stride=1 is supported"
    N, Cin, H, W = x_shape_nchw
    Cout = params["w1"].shape[-1]
    if not use_1x1conv:
        assert Cin == Cout, "identity shortcut requires Cin == Cout"
    NH, WCi, WCo = N * H, W * Cin, W * Cout

    # ---- constants (built once per parameter set, hoisted out of the call path) ----
    wt1 = _stacked_conv_weights(params["w1"], W)                     # (3*WCi, WCo) f32
    wt2 = _stacked_conv_weights(params["w2"], W).astype(jnp.bfloat16)
    consts_extra = []
    if use_1x1conv:
        # fuse the 1x1 shortcut conv into conv1's dot as extra output lanes
        w3blk = jnp.kron(jnp.eye(W, dtype=jnp.float32),
                         params["w3"].astype(jnp.float32))           # (WCi, WCo)
        w3pad = jnp.concatenate([jnp.zeros((WCi, WCo), jnp.float32), w3blk,
                                 jnp.zeros((WCi, WCo), jnp.float32)], axis=0)
        wt1 = jnp.concatenate([wt1, w3pad], axis=1)                  # (3*WCi, 2*WCo)
        b3l = jnp.tile(params["b3"].reshape(1, -1).astype(jnp.float32), (1, W))
        consts_extra = [b3l]
    wt1 = wt1.astype(jnp.bfloat16)

    sel = jnp.tile(jnp.eye(Cout, dtype=jnp.float32), (W, 1))         # (WCo, Cout)
    sel2 = jnp.kron(jnp.eye(2, dtype=jnp.float32), sel)              # (2*WCo, 2*Cout)
    selt = jnp.transpose(sel)                                        # (Cout, WCo)

    h_of_row = jnp.arange(NH, dtype=jnp.int32) % H
    m_top = (h_of_row != 0).astype(jnp.float32).reshape(NH, 1)       # 0 at h == 0
    m_bot = (h_of_row != H - 1).astype(jnp.float32).reshape(NH, 1)   # 0 at h == H-1

    chan = lambda p: p.reshape(1, -1).astype(jnp.float32)
    consts = [m_top, m_bot,
              wt1, chan(params["gamma1"]), chan(params["beta1"]),
              wt2, chan(params["gamma2"]), chan(params["beta2"]),
              sel2, selt] + consts_extra

    kernel = _make_residual_kernel(N, H, W, Cin, Cout, use_1x1conv, eps)

    # advisory cost estimate (helps XLA schedule around the custom call)
    conv1_n = 2 * WCo if use_1x1conv else WCo
    flops = (2 * NH * (3 * WCi) * conv1_n + 2 * NH * (3 * WCo) * WCo
             + 2 * 2 * (2 * WCo * 2 * Cout + 2 * Cout * WCo) + 12 * NH * WCo)
    bytes_accessed = NH * WCi * 4 + NH * WCo * 4 + sum(
        int(c.size) * c.dtype.itemsize for c in consts)
    cost = pl.CostEstimate(flops=int(flops), transcendentals=4 * Cout,
                           bytes_accessed=int(bytes_accessed))

    # TODO(synk): for shapes that outgrow one VMEM block (or to use both v7x
    # TensorCores), add a grid over N/H row-tiles with BlockSpecs and a two-pass
    # cross-tile BatchNorm-stats reduction, sizing tiles against v7x's 64 MiB VMEM;
    # at these sizes a single grid-less invocation is fastest.
    call = pl.pallas_call(
        kernel,
        out_shape=jax.ShapeDtypeStruct((NH, WCo), jnp.float32),
        in_specs=[pl.BlockSpec(memory_space=pltpu.MemorySpace.VMEM)] * (1 + len(consts)),
        out_specs=pl.BlockSpec(memory_space=pltpu.MemorySpace.VMEM),
        cost_estimate=cost,
    )

    @jax.jit
    def fwd(x_nchw):
        x = jnp.transpose(x_nchw, (0, 2, 3, 1)).astype(jnp.float32)   # NCHW -> NHWC
        x2d = x.reshape(NH, WCi)            # lane-dense slab: rows = (n,h), lanes = (w,c)
        out2d = call(x2d, *consts)
        return jnp.transpose(out2d.reshape(N, H, W, Cout), (0, 3, 1, 2))

    return fwd


# ---------------- pure-JAX reference (for correctness check) ----------------

def _conv_ref(x, w, b):
    y = jax.lax.conv_general_dilated(
        x, w, window_strides=(1, 1), padding=((1, 1), (1, 1)),
        dimension_numbers=("NHWC", "HWIO", "NHWC"))
    return y + b.reshape(1, 1, 1, -1)


def _bn_ref(y, gamma, beta, eps=1e-5):
    mean = jnp.mean(y, axis=(0, 1, 2), keepdims=True)
    var = jnp.mean((y - mean) ** 2, axis=(0, 1, 2), keepdims=True)
    return (y - mean) / jnp.sqrt(var + eps) * gamma.reshape(1, 1, 1, -1) + beta.reshape(1, 1, 1, -1)


def residual_forward_ref(x_nchw, params, *, use_1x1conv, eps=1e-5):
    x = jnp.transpose(x_nchw, (0, 2, 3, 1)).astype(jnp.float32)
    y = jax.nn.relu(_bn_ref(_conv_ref(x, params["w1"], params["b1"]),
                            params["gamma1"], params["beta1"], eps))
    y = _bn_ref(_conv_ref(y, params["w2"], params["b2"]),
                params["gamma2"], params["beta2"], eps)
    if use_1x1conv:
        w3 = params["w3"].reshape(1, 1, *params["w3"].shape)
        xr = jax.lax.conv_general_dilated(
            x, w3, window_strides=(1, 1), padding=((0, 0), (0, 0)),
            dimension_numbers=("NHWC", "HWIO", "NHWC")) + params["b3"].reshape(1, 1, 1, -1)
    else:
        xr = x
    return jnp.transpose(jax.nn.relu(y + xr), (0, 3, 1, 2))


def init_params(key, in_channels, out_channels, use_1x1conv):
    ks = jax.random.split(key, 8)
    p = {
        "w1": 0.1 * jax.random.normal(ks[0], (3, 3, in_channels, out_channels), jnp.float32),
        "b1": 0.1 * jax.random.normal(ks[1], (out_channels,), jnp.float32),
        "w2": 0.1 * jax.random.normal(ks[2], (3, 3, out_channels, out_channels), jnp.float32),
        "b2": 0.1 * jax.random.normal(ks[3], (out_channels,), jnp.float32),
        # BatchNorm affine params (PyTorch init is gamma=1, beta=0; perturbed for a non-trivial test)
        "gamma1": 1.0 + 0.1 * jax.random.normal(ks[4], (out_channels,), jnp.float32),
        "beta1": 0.1 * jax.random.normal(ks[5], (out_channels,), jnp.float32),
        "gamma2": 1.0 + 0.1 * jax.random.normal(ks[6], (out_channels,), jnp.float32),
        "beta2": 0.1 * jax.random.normal(ks[7], (out_channels,), jnp.float32),
    }
    if use_1x1conv:
        k8, k9 = jax.random.split(jax.random.fold_in(key, 123))
        p["w3"] = 0.1 * jax.random.normal(k8, (in_channels, out_channels), jnp.float32)
        p["b3"] = 0.1 * jax.random.normal(k9, (out_channels,), jnp.float32)
    return p


if __name__ == "__main__":
    key = jax.random.PRNGKey(0)
    kx, kp1, kp2 = jax.random.split(key, 3)

    # Conv dots run with bf16 MXU operands (same effective precision as TPU DEFAULT
    # f32 matmuls and as the XLA reference convolutions); BN statistics are now exact
    # f32 / HIGHEST, so agreement with the reference is bf16-level on the conv path.
    TOL = 5e-2

    # Case 1: Residual(4, 8, use_1x1conv=True, stride=1)
    x = jax.random.normal(kx, (2, 4, 16, 16), jnp.float32)            # NCHW, like PyTorch
    params = init_params(kp1, 4, 8, use_1x1conv=True)
    fwd = make_residual_forward(params, x.shape, use_1x1conv=True)
    out = jax.block_until_ready(fwd(x))
    ref = residual_forward_ref(x, params, use_1x1conv=True)
    assert out.shape == (2, 8, 16, 16)
    assert jnp.allclose(out, ref, atol=TOL, rtol=TOL), float(jnp.max(jnp.abs(out - ref)))

    # Case 2: Residual(8, 8) (identity shortcut)
    x2 = jax.random.normal(jax.random.fold_in(kx, 1), (2, 8, 16, 16), jnp.float32)
    params2 = init_params(kp2, 8, 8, use_1x1conv=False)
    fwd2 = make_residual_forward(params2, x2.shape, use_1x1conv=False)
    out2 = jax.block_until_ready(fwd2(x2))
    ref2 = residual_forward_ref(x2, params2, use_1x1conv=False)
    assert out2.shape == (2, 8, 16, 16)
    assert jnp.allclose(out2, ref2, atol=TOL, rtol=TOL), float(jnp.max(jnp.abs(out2 - ref2)))

    print("KERNEL_OK")
</pallas_src>

<mosaic_0001>
module attributes {stable_mosaic.version = 11 : i64} {
  func.func @kernel(%arg0: memref<32x64xf32, #tpu.memory_space<vmem>>, %arg1: memref<32x1xf32, #tpu.memory_space<vmem>>, %arg2: memref<32x1xf32, #tpu.memory_space<vmem>>, %arg3: memref<192x256xbf16, #tpu.memory_space<vmem>>, %arg4: memref<1x8xf32, #tpu.memory_space<vmem>>, %arg5: memref<1x8xf32, #tpu.memory_space<vmem>>, %arg6: memref<384x128xbf16, #tpu.memory_space<vmem>>, %arg7: memref<1x8xf32, #tpu.memory_space<vmem>>, %arg8: memref<1x8xf32, #tpu.memory_space<vmem>>, %arg9: memref<256x16xf32, #tpu.memory_space<vmem>>, %arg10: memref<8x128xf32, #tpu.memory_space<vmem>>, %arg11: memref<1x128xf32, #tpu.memory_space<vmem>>, %arg12: memref<32x128xf32, #tpu.memory_space<vmem>>) attributes {dimension_semantics = [], scalar_prefetch = 0 : i64, scratch_operands = 0 : i64, tpu.core_type = #tpu.core_type<tc>} {
    %c0 = arith.constant 0 : index
    %c0_0 = arith.constant 0 : index
    %0 = vector.load %arg0[%c0, %c0_0] : memref<32x64xf32, #tpu.memory_space<vmem>>, vector<32x64xf32>
    %c0_1 = arith.constant 0 : index
    %c0_2 = arith.constant 0 : index
    %1 = vector.load %arg1[%c0_1, %c0_2] : memref<32x1xf32, #tpu.memory_space<vmem>>, vector<32x1xf32>
    %c0_3 = arith.constant 0 : index
    %c0_4 = arith.constant 0 : index
    %2 = vector.load %arg2[%c0_3, %c0_4] : memref<32x1xf32, #tpu.memory_space<vmem>>, vector<32x1xf32>
    %c1_i32 = arith.constant 1 : i32
    %3 = tpu.dynamic_rotate %0 by %c1_i32 dim 0 : vector<32x64xf32>, i32 -> vector<32x64xf32>
    %4 = vector.broadcast %1 : vector<32x1xf32> to vector<32x64xf32>
    %5 = arith.mulf %3, %4 : vector<32x64xf32>
    %c31_i32 = arith.constant 31 : i32
    %6 = tpu.dynamic_rotate %0 by %c31_i32 dim 0 : vector<32x64xf32>, i32 -> vector<32x64xf32>
    %7 = vector.broadcast %2 : vector<32x1xf32> to vector<32x64xf32>
    %8 = arith.mulf %6, %7 : vector<32x64xf32>
    %9 = tpu.concatenate %5, %0, %8 in 1 : vector<32x64xf32>, vector<32x64xf32>, vector<32x64xf32> -> vector<32x192xf32>
    %10 = arith.truncf %9 : vector<32x192xf32> to vector<32x192xbf16>
    %c0_5 = arith.constant 0 : index
    %c0_6 = arith.constant 0 : index
    %11 = vector.load %arg3[%c0_5, %c0_6] : memref<192x256xbf16, #tpu.memory_space<vmem>>, vector<192x256xbf16>
    %cst = arith.constant dense<0.000000e+00> : vector<32x256xf32>
    %12 = tpu.matmul %10, %11, %cst {dimension_numbers = #tpu.dot_dimension_numbers<[1], [0], [0], [1], [0, 0, 1, 1], [], []>} : vector<32x192xbf16>, vector<192x256xbf16>, vector<32x256xf32> -> vector<32x256xf32>
    %13 = vector.extract_strided_slice %12 {offsets = [0, 0], sizes = [32, 128], strides = [1, 1]} : vector<32x256xf32> to vector<32x128xf32>
    %14 = vector.extract_strided_slice %12 {offsets = [0, 128], sizes = [32, 128], strides = [1, 1]} : vector<32x256xf32> to vector<32x128xf32>
    %c0_7 = arith.constant 0 : index
    %c0_8 = arith.constant 0 : index
    %15 = vector.load %arg11[%c0_7, %c0_8] : memref<1x128xf32, #tpu.memory_space<vmem>>, vector<1x128xf32>
    %16 = vector.broadcast %15 : vector<1x128xf32> to vector<32x128xf32>
    %17 = arith.addf %14, %16 : vector<32x128xf32>
    %18 = arith.mulf %13, %13 : vector<32x128xf32>
    %19 = tpu.concatenate %13, %18 in 1 : vector<32x128xf32>, vector<32x128xf32> -> vector<32x256xf32>
    %cst_9 = arith.constant dense<0.000000e+00> : vector<256xf32>
    %20 = vector.multi_reduction <add>, %19, %cst_9 [0] : vector<32x256xf32> to vector<256xf32>
    %21 = vector.shape_cast %20 : vector<256xf32> to vector<1x256xf32>
    %c0_10 = arith.constant 0 : index
    %c0_11 = arith.constant 0 : index
    %22 = vector.load %arg9[%c0_10, %c0_11] : memref<256x16xf32, #tpu.memory_space<vmem>>, vector<256x16xf32>
    %cst_12 = arith.constant dense<0.000000e+00> : vector<1x16xf32>
    %23 = tpu.matmul %21, %22, %cst_12 {dimension_numbers = #tpu.dot_dimension_numbers<[1], [0], [0], [1], [0, 0, 1, 1], [], []>, precision = #tpu.contract_precision<fp32>} : vector<1x256xf32>, vector<256x16xf32>, vector<1x16xf32> -> vector<1x16xf32>
    %24 = vector.extract_strided_slice %23 {offsets = [0, 0], sizes = [1, 8], strides = [1, 1]} : vector<1x16xf32> to vector<1x8xf32>
    %cst_13 = arith.constant 0.001953125 : f32
    %25 = vector.broadcast %cst_13 : f32 to vector<1x8xf32>
    %26 = arith.mulf %24, %25 : vector<1x8xf32>
    %27 = vector.extract_strided_slice %23 {offsets = [0, 8], sizes = [1, 8], strides = [1, 1]} : vector<1x16xf32> to vector<1x8xf32>
    %cst_14 = arith.constant 0.001953125 : f32
    %28 = vector.broadcast %cst_14 : f32 to vector<1x8xf32>
    %29 = arith.mulf %27, %28 : vector<1x8xf32>
    %30 = arith.mulf %26, %26 : vector<1x8xf32>
    %31 = arith.subf %29, %30 : vector<1x8xf32>
    %c0_15 = arith.constant 0 : index
    %c0_16 = arith.constant 0 : index
    %32 = vector.load %arg4[%c0_15, %c0_16] : memref<1x8xf32, #tpu.memory_space<vmem>>, vector<1x8xf32>
    %cst_17 = arith.constant 9.99999974E-6 : f32
    %33 = vector.broadcast %cst_17 : f32 to vector<1x8xf32>
    %34 = arith.addf %31, %33 : vector<1x8xf32>
    %35 = math.rsqrt %34 : vector<1x8xf32>
    %36 = arith.mulf %32, %35 : vector<1x8xf32>
    %c0_18 = arith.constant 0 : index
    %c0_19 = arith.constant 0 : index
    %37 = vector.load %arg5[%c0_18, %c0_19] : memref<1x8xf32, #tpu.memory_space<vmem>>, vector<1x8xf32>
    %38 = arith.mulf %26, %36 : vector<1x8xf32>
    %39 = arith.subf %37, %38 : vector<1x8xf32>
    %40 = tpu.concatenate %36, %39 in 0 : vector<1x8xf32>, vector<1x8xf32> -> vector<2x8xf32>
    %c0_20 = arith.constant 0 : index
    %c0_21 = arith.constant 0 : index
    %41 = vector.load %arg10[%c0_20, %c0_21] : memref<8x128xf32, #tpu.memory_space<vmem>>, vector<8x128xf32>
    %cst_22 = arith.constant dense<0.000000e+00> : vector<2x128xf32>
    %42 = tpu.matmul %40, %41, %cst_22 {dimension_numbers = #tpu.dot_dimension_numbers<[1], [0], [0], [1], [0, 0, 1, 1], [], []>, precision = #tpu.contract_precision<fp32>} : vector<2x8xf32>, vector<8x128xf32>, vector<2x128xf32> -> vector<2x128xf32>
    %43 = vector.extract_strided_slice %42 {offsets = [0, 0], sizes = [1, 128], strides = [1, 1]} : vector<2x128xf32> to vector<1x128xf32>
    %44 = vector.broadcast %43 : vector<1x128xf32> to vector<32x128xf32>
    %45 = arith.mulf %13, %44 : vector<32x128xf32>
    %46 = vector.extract_strided_slice %42 {offsets = [1, 0], sizes = [1, 128], strides = [1, 1]} : vector<2x128xf32> to vector<1x128xf32>
    %47 = vector.broadcast %46 : vector<1x128xf32> to vector<32x128xf32>
    %48 = arith.addf %45, %47 : vector<32x128xf32>
    %cst_23 = arith.constant 0.000000e+00 : f32
    %49 = vector.broadcast %cst_23 : f32 to vector<32x128xf32>
    %50 = arith.maximumf %48, %49 : vector<32x128xf32>
    %c1_i32_24 = arith.constant 1 : i32
    %51 = tpu.dynamic_rotate %50 by %c1_i32_24 dim 0 : vector<32x128xf32>, i32 -> vector<32x128xf32>
    %52 = vector.broadcast %1 : vector<32x1xf32> to vector<32x128xf32>
    %53 = arith.mulf %51, %52 : vector<32x128xf32>
    %c31_i32_25 = arith.constant 31 : i32
    %54 = tpu.dynamic_rotate %50 by %c31_i32_25 dim 0 : vector<32x128xf32>, i32 -> vector<32x128xf32>
    %55 = vector.broadcast %2 : vector<32x1xf32> to vector<32x128xf32>
    %56 = arith.mulf %54, %55 : vector<32x128xf32>
    %57 = tpu.concatenate %53, %50, %56 in 1 : vector<32x128xf32>, vector<32x128xf32>, vector<32x128xf32> -> vector<32x384xf32>
    %58 = arith.truncf %57 : vector<32x384xf32> to vector<32x384xbf16>
    %c0_26 = arith.constant 0 : index
    %c0_27 = arith.constant 0 : index
    %59 = vector.load %arg6[%c0_26, %c0_27] : memref<384x128xbf16, #tpu.memory_space<vmem>>, vector<384x128xbf16>
    %cst_28 = arith.constant dense<0.000000e+00> : vector<32x128xf32>
    %60 = tpu.matmul %58, %59, %cst_28 {dimension_numbers = #tpu.dot_dimension_numbers<[1], [0], [0], [1], [0, 0, 1, 1], [], []>} : vector<32x384xbf16>, vector<384x128xbf16>, vector<32x128xf32> -> vector<32x128xf32>
    %61 = arith.mulf %60, %60 : vector<32x128xf32>
    %62 = tpu.concatenate %60, %61 in 1 : vector<32x128xf32>, vector<32x128xf32> -> vector<32x256xf32>
    %cst_29 = arith.constant dense<0.000000e+00> : vector<256xf32>
    %63 = vector.multi_reduction <add>, %62, %cst_29 [0] : vector<32x256xf32> to vector<256xf32>
    %64 = vector.shape_cast %63 : vector<256xf32> to vector<1x256xf32>
    %c0_30 = arith.constant 0 : index
    %c0_31 = arith.constant 0 : index
    %65 = vector.load %arg9[%c0_30, %c0_31] : memref<256x16xf32, #tpu.memory_space<vmem>>, vector<256x16xf32>
    %cst_32 = arith.constant dense<0.000000e+00> : vector<1x16xf32>
    %66 = tpu.matmul %64, %65, %cst_32 {dimension_numbers = #tpu.dot_dimension_numbers<[1], [0], [0], [1], [0, 0, 1, 1], [], []>, precision = #tpu.contract_precision<fp32>} : vector<1x256xf32>, vector<256x16xf32>, vector<1x16xf32> -> vector<1x16xf32>
    %67 = vector.extract_strided_slice %66 {offsets = [0, 0], sizes = [1, 8], strides = [1, 1]} : vector<1x16xf32> to vector<1x8xf32>
    %cst_33 = arith.constant 0.001953125 : f32
    %68 = vector.broadcast %cst_33 : f32 to vector<1x8xf32>
    %69 = arith.mulf %67, %68 : vector<1x8xf32>
    %70 = vector.extract_strided_slice %66 {offsets = [0, 8], sizes = [1, 8], strides = [1, 1]} : vector<1x16xf32> to vector<1x8xf32>
    %cst_34 = arith.constant 0.001953125 : f32
    %71 = vector.broadcast %cst_34 : f32 to vector<1x8xf32>
    %72 = arith.mulf %70, %71 : vector<1x8xf32>
    %73 = arith.mulf %69, %69 : vector<1x8xf32>
    %74 = arith.subf %72, %73 : vector<1x8xf32>
    %c0_35 = arith.constant 0 : index
    %c0_36 = arith.constant 0 : index
    %75 = vector.load %arg7[%c0_35, %c0_36] : memref<1x8xf32, #tpu.memory_space<vmem>>, vector<1x8xf32>
    %cst_37 = arith.constant 9.99999974E-6 : f32
    %76 = vector.broadcast %cst_37 : f32 to vector<1x8xf32>
    %77 = arith.addf %74, %76 : vector<1x8xf32>
    %78 = math.rsqrt %77 : vector<1x8xf32>
    %79 = arith.mulf %75, %78 : vector<1x8xf32>
    %c0_38 = arith.constant 0 : index
    %c0_39 = arith.constant 0 : index
    %80 = vector.load %arg8[%c0_38, %c0_39] : memref<1x8xf32, #tpu.memory_space<vmem>>, vector<1x8xf32>
    %81 = arith.mulf %69, %79 : vector<1x8xf32>
    %82 = arith.subf %80, %81 : vector<1x8xf32>
    %83 = tpu.concatenate %79, %82 in 0 : vector<1x8xf32>, vector<1x8xf32> -> vector<2x8xf32>
    %c0_40 = arith.constant 0 : index
    %c0_41 = arith.constant 0 : index
    %84 = vector.load %arg10[%c0_40, %c0_41] : memref<8x128xf32, #tpu.memory_space<vmem>>, vector<8x128xf32>
    %cst_42 = arith.constant dense<0.000000e+00> : vector<2x128xf32>
    %85 = tpu.matmul %83, %84, %cst_42 {dimension_numbers = #tpu.dot_dimension_numbers<[1], [0], [0], [1], [0, 0, 1, 1], [], []>, precision = #tpu.contract_precision<fp32>} : vector<2x8xf32>, vector<8x128xf32>, vector<2x128xf32> -> vector<2x128xf32>
    %86 = vector.extract_strided_slice %85 {offsets = [0, 0], sizes = [1, 128], strides = [1, 1]} : vector<2x128xf32> to vector<1x128xf32>
    %87 = vector.broadcast %86 : vector<1x128xf32> to vector<32x128xf32>
    %88 = arith.mulf %60, %87 : vector<32x128xf32>
    %89 = vector.extract_strided_slice %85 {offsets = [1, 0], sizes = [1, 128], strides = [1, 1]} : vector<2x128xf32> to vector<1x128xf32>
    %90 = vector.broadcast %89 : vector<1x128xf32> to vector<32x128xf32>
    %91 = arith.addf %88, %90 : vector<32x128xf32>
    %92 = arith.addf %91, %17 : vector<32x128xf32>
    %cst_43 = arith.constant 0.000000e+00 : f32
    %93 = vector.broadcast %cst_43 : f32 to vector<32x128xf32>
    %94 = arith.maximumf %92, %93 : vector<32x128xf32>
    %c0_44 = arith.constant 0 : index
    %c0_45 = arith.constant 0 : index
    %95 = vector.load %arg12[%c0_44, %c0_45] : memref<32x128xf32, #tpu.memory_space<vmem>>, vector<32x128xf32>
    tpu.vector_store %arg12[%c0_44, %c0_45], %94 {strides = array<i32>} : memref<32x128xf32, #tpu.memory_space<vmem>>, vector<32x128xf32>,
    return
  }
}

</mosaic_0001>

<bundles_post_ra>
// kernel: fwd.1
= control target key start
LH: loop header
LB: loop body
LE: loop exit
PB: predicated region body
PF: predicated region fallthrough
CT: control target
= control target key end

     0   :  { %v58_v0 = vlaneseq  ;;  %v4611_v1 = vmov 0   ;;  %s4612_s24 = smov 64   ;;  %vm138_vm2 = vcmask 523264   ;;  %s4615_s30 = smov 120   ;;  %vm4617_vm3 = vmmov 0   ;;  %s5737_s2 = inlined_call_operand.vmem [shape: f32[32,1], index: 2, kind: input, shape index: {}]   ;;  %s5738_s1 = inlined_call_operand.vmem [shape: f32[32,1], index: 1, kind: input, shape index: {}]   ;;  %s5739_s0 = inlined_call_operand.vmem [shape: f32[32,64], index: 0, kind: input, shape index: {}]   ;;  %s5740_s3 = inlined_call_operand.vmem [shape: bf16[192,256], index: 3, kind: input, shape index: {}]   ;;  %s5741_s9 = inlined_call_operand.vmem [shape: f32[256,16], index: 9, kind: input, shape index: {}]   ;;  %s5742_s10 = inlined_call_operand.vmem [shape: f32[8,128], index: 10, kind: input, shape index: {}]   ;;  %s5743_s6 = inlined_call_operand.vmem [shape: bf16[384,128], index: 6, kind: input, shape index: {}]   ;;  %s5744_s4 = inlined_call_operand.vmem [shape: f32[1,8], index: 4, kind: input, shape index: {}]   ;;  %s5745_s5 = inlined_call_operand.vmem [shape: f32[1,8], index: 5, kind: input, shape index: {}]   ;;  %s5746_s7 = inlined_call_operand.vmem [shape: f32[1,8], index: 7, kind: input, shape index: {}]   ;;  %s5747_s8 = inlined_call_operand.vmem [shape: f32[1,8], index: 8, kind: input, shape index: {}]   ;;  %s5748_s11 = inlined_call_operand.vmem [shape: f32[1,128], index: 11, kind: input, shape index: {}]   ;;  %s5749_s12 = inlined_call_operand.vmem [shape: f32[32,128], index: 12, kind: output, shape index: {}]  }
   0x1   :  { %4536 = vset.pattern.permute.xlu1 %v4611_v1  ;;  %4535 = vset.pattern.permute.xlu0 %v4611_v1  ;;  %v50_v2 = vld [vmem:[%s5737_s2] sm:$0xff]  ;;  %v51_v5 = vld [vmem:[%s5737_s2 + $0x8] sm:$0xff]  ;;  %v44_v7 = vld [vmem:[%s5739_s0 + $0x10] sm:$0xff]  ;;  %vm1315_vm4 = vcmask 1040384   ;;  %vm1318_vm5 = vcmask 64512  }
   0x2   :  { %v46_v3 = vld [vmem:[%s5738_s1] sm:$0xff]  ;;  %100 = vperm.xlu1 %4536, %v50_v2   ;;  %v4689_v4 = vshrl.u32 %v58_v0, 7  ;;  %v47_v6 = vld [vmem:[%s5738_s1 + $0x8] sm:$0xff]  ;;  %v45_v8 = vld [vmem:[%s5739_s0 + $0x18] sm:$0xff]  ;;  %v91_v21 = vrot.slane %v44_v7, 1  ;;  %v56_v27 = vrot.slane %v44_v7, 7 }
   0x3   :  { %67 = vperm.xlu0 %4535, %v46_v3   ;;  %v42_v9 = vld [vmem:[%s5739_s0] sm:$0xff]  ;;  %v43_v10 = vld [vmem:[%s5739_s0 + $0x8] sm:$0xff]  ;;  %v49_v11 = vld [vmem:[%s5738_s1 + $0x18] sm:$0xff]  ;;  %v57_v17 = vrot.slane %v45_v8, 7  ;;  %v92_v33 = vrot.slane %v45_v8, 1  ;;  %v4542_v38 = vpack.i.bf16 %v45_v8, %v44_v7 }
   0x4   :  { %5809 = vst [vmem:[#allocation2_spill] sm:$0xff] %v4689_v4  ;;  %vm93_vm0 = vcmp.lt.s32.totalorder %v4689_v4, 7  ;;  %vm60_vm1 = vcmp.lt.s32.totalorder %v4689_v4, 1  ;;  %v4547_v12 = vld [vmem:[%s5740_s3 + $0x4] ss:$8 sps:$4 sm:$0xff]   ;;  %v89_v13 = vrot.slane %v42_v9, 1  ;;  %v4537_v39 = vpack.i.bf16 %v43_v10, %v42_v9 }
   0x5   :  { %v90_v14 = vrot.slane %v43_v10, 1  ;;  %v4549_v15 = vld [vmem:[%s5740_s3] ss:$8 sps:$4 sm:$0xff]   ;;  %v54_v16 = vrot.slane %v42_v9, 7  ;;  %v48_v18 = vld [vmem:[%s5738_s1 + $0x10] sm:$0xff]  ;;  %297 = vmatprep.subr.bf16.mxu0 %v4547_v12  ;;  %v55_v24 = vrot.slane %v43_v10, 7  ;;  %v4756_v31 = vsel %vm60_vm1, %v56_v27, %v57_v17 }
   0x6   :  { %105 = vperm.xlu1 %4536, %v51_v5   ;;  %v4550_v19 = vld [vmem:[%s5740_s3 + $0x14] ss:$8 sps:$4 sm:$0xff]   ;;  %298 = vmatpush1.bf16.msra.mxu0 %v4549_v15  ;;  %v4552_v22 = vld [vmem:[%s5740_s3 + $0x10] ss:$8 sps:$4 sm:$0xff]   ;;  %v4553_v25 = vld [vmem:[%s5740_s3 + $0x24] ss:$8 sps:$4 sm:$0xff]   ;;  %v4770_v36 = vsel %vm93_vm0, %v92_v33, %v89_v13  ;;  %v4774_v37 = vsel %vm93_vm0, %v91_v21, %v92_v33 }
   0x7   :  { %72 = vperm.xlu0 %4535, %v47_v6   ;;  %v4728_v20 = vsel %vm93_vm0, %v89_v13, %v90_v14  ;;  %v4735_v23 = vsel %vm60_vm1, %v57_v17, %v54_v16  ;;  %299 = vmatprep.subr.bf16.mxu0 %v4550_v19  ;;  %v4742_v26 = vsel %vm93_vm0, %v90_v14, %v91_v21  ;;  %v53_v29 = vld [vmem:[%s5737_s2 + $0x18] sm:$0xff]  ;;  %v52_v30 = vld [vmem:[%s5737_s2 + $0x10] sm:$0xff]  ;;  %v4555_v34 = vld [vmem:[%s5740_s3 + $0x20] ss:$8 sps:$4 sm:$0xff]  }
   0x8   :  { %v4746_v28 = vsel %vm60_vm1, %v54_v16, %v55_v24  ;;  %v4760_v32 = vsel %vm60_vm1, %v55_v24, %v56_v27  ;;  %v4556_v35 = vld [vmem:[%s5740_s3 + $0x34] ss:$8 sps:$4 sm:$0xff]   ;;  %v4558_v40 = vld [vmem:[%s5740_s3 + $0x30] ss:$8 sps:$4 sm:$0xff]   ;;  %v4559_v41 = vld [vmem:[%s5740_s3 + $0x44] ss:$8 sps:$4 sm:$0xff]  }
   0x9   :  { %v4561_v42 = vld [vmem:[%s5740_s3 + $0x40] ss:$8 sps:$4 sm:$0xff]   ;;  %v4562_v43 = vld [vmem:[%s5740_s3 + $0x54] ss:$8 sps:$4 sm:$0xff]   ;;  %v4564_v44 = vld [vmem:[%s5740_s3 + $0x50] ss:$8 sps:$4 sm:$0xff]  }
   0xa   :  { %82 = vperm.xlu1 %4536, %v49_v11   ;;  %300 = vmatpush1.bf16.msra.mxu0 %v4552_v22  ;;  %v4565_v45 = vld [vmem:[%s5740_s3 + $0x64] ss:$8 sps:$4 sm:$0xff]   ;;  %v4567_v46 = vld [vmem:[%s5740_s3 + $0x60] ss:$8 sps:$4 sm:$0xff]   ;;  %v4568_v47 = vld [vmem:[%s5740_s3 + $0x74] ss:$8 sps:$4 sm:$0xff]  }
   0xb   :  { %77 = vperm.xlu0 %4535, %v48_v18   ;;  %301 = vmatprep.subr.bf16.mxu0 %v4553_v25  ;;  %v4570_v48 = vld [vmem:[%s5740_s3 + $0x70] ss:$8 sps:$4 sm:$0xff]   ;;  %v399_v49 = vld [vmem:[%s5741_s9 + $0x80] sm:$0xff]  ;;  %v400_v50 = vld [vmem:[%s5741_s9 + $0x88] sm:$0xff] }
   0xc   :  { %v4571_v51 = vld [vmem:[%s5740_s3 + $0x84] ss:$8 sps:$4 sm:$0xff]   ;;  %v464_v52 = vand.u32 4294901760, %v399_v49  ;;  %v467_v53 = vand.u32 4294901760, %v400_v50  ;;  %v4573_v55 = vld [vmem:[%s5740_s3 + $0x80] ss:$8 sps:$4 sm:$0xff]  }
   0xd   :  { %v4574_v56 = vld [vmem:[%s5740_s3 + $0x94] ss:$8 sps:$4 sm:$0xff]   ;;  %v4576_v57 = vld [vmem:[%s5740_s3 + $0x90] ss:$8 sps:$4 sm:$0xff]   ;;  %v4577_v58 = vld [vmem:[%s5740_s3 + $0xa4] ss:$8 sps:$4 sm:$0xff]  }
   0xe   :  { %115 = vperm.xlu1 %4536, %v53_v29   ;;  %302 = vmatpush1.bf16.msra.mxu0 %v4555_v34  ;;  %v4812_v54 = vpack.c.bf16 %v467_v53, %v464_v52  ;;  %v4579_v59 = vld [vmem:[%s5740_s3 + $0xa0] ss:$8 sps:$4 sm:$0xff]   ;;  %v4580_v60 = vld [vmem:[%s5740_s3 + $0xb4] ss:$8 sps:$4 sm:$0xff]   ;;  %v4833_v61 = vsub.f32 %v399_v49, %v464_v52  ;;  %v4835_v62 = vsub.f32 %v400_v50, %v467_v53  ;;  %v4582_v63 = vld [vmem:[%s5740_s3 + $0xb0] ss:$8 sps:$4 sm:$0xff]  }
   0xf   :  { %110 = vperm.xlu0 %4535, %v52_v30   ;;  %303 = vmatprep.subr.bf16.mxu0 %v4556_v35  ;;  %v404_v52 = vld [vmem:[%s5741_s9 + $0xa8] sm:$0xff] }
  0x10   :  { %4126 = vmatprep.subr.bf16.mxu1 %v4812_v54  ;;  %v4842_v0 = vpack.c.bf16 %v4835_v62, %v4833_v61 }
  0x12   :  { %4543 = vrot.lane.b32.xlu1 %v4542_v38, %s4612_s24  ;;  %304 = vmatpush1.bf16.msra.mxu0 %v4558_v40  ;;  %5810 = vst [vmem:[#allocation3_spill] sm:$0xff] %v4842_v0  ;;  %v401_v38 = vld [vmem:[%s5741_s9 + $0x90] sm:$0xff] }
  0x13   :  { %4538 = vrot.lane.b32.xlu0 %v4537_v39, %s4612_s24  ;;  %305 = vmatprep.subr.bf16.mxu0 %v4559_v41  ;;  %v402_v39 = vld [vmem:[%s5741_s9 + $0x98] sm:$0xff]  ;;  %v470_v40 = vand.u32 4294901760, %v401_v38 }
  0x14   :  { %v473_v41 = vand.u32 4294901760, %v402_v39 }
  0x16   :  { %306 = vmatpush1.bf16.msra.mxu0 %v4561_v42  ;;  %v385_v42 = vld [vmem:[%s5741_s9 + $0x10] sm:$0xff] }
  0x17   :  { %307 = vmatprep.subr.bf16.mxu0 %v4562_v43  ;;  %v386_v43 = vld [vmem:[%s5741_s9 + $0x18] sm:$0xff] }
  0x1a   :  { %308 = vmatpush1.bf16.msra.mxu0 %v4564_v44 }
  0x1b   :  { %309 = vmatprep.subr.bf16.mxu0 %v4565_v45  ;;  %v422_v45 = vand.u32 4294901760, %v385_v42 }
  0x1d   :  { %v4914_v49 = vsub.f32 %v385_v42, %v422_v45 }
  0x1e   :  { %310 = vmatpush1.bf16.msra.mxu0 %v4567_v46  ;;  %v425_v46 = vand.u32 4294901760, %v386_v43 }
  0x1f   :  { %311 = vmatprep.subr.bf16.mxu0 %v4568_v47  ;;  %v4909_v47 = vsub.f32 %v401_v38, %v470_v40  ;;  %v391_v38 = vld [vmem:[%s5741_s9 + $0x40] sm:$0xff] }
  0x20   :  { %v4916_v50 = vsub.f32 %v386_v43, %v425_v46 }
  0x22   :  { %312 = vmatpush1.bf16.msra.mxu0 %v4570_v48  ;;  %v4911_v48 = vsub.f32 %v402_v39, %v473_v41  ;;  %v392_v39 = vld [vmem:[%s5741_s9 + $0x48] sm:$0xff] }
  0x23   :  { %313 = vmatprep.subr.bf16.mxu0 %v4571_v51  ;;  %v403_v51 = vld [vmem:[%s5741_s9 + $0xa0] sm:$0xff]  ;;  %v443_v42 = vand.u32 4294901760, %v392_v39 }
  0x26   :  { %314 = vmatpush1.bf16.msra.mxu0 %v4573_v55  ;;  %v4928_v55 = vpack.c.bf16 %v4911_v48, %v4909_v47 }
  0x27   :  { %315 = vmatprep.subr.bf16.mxu0 %v4574_v56  ;;  %v476_v56 = vand.u32 4294901760, %v403_v51 }
  0x28   :  { %5820 = vst [vmem:[#allocation13_spill] sm:$0xff] %v4928_v55 }
  0x2a   :  { %316 = vmatpush1.bf16.msra.mxu0 %v4576_v57  ;;  %v479_v57 = vand.u32 4294901760, %v404_v52 }
  0x2b   :  { %317 = vmatprep.subr.bf16.mxu0 %v4577_v58  ;;  %v387_v58 = vld [vmem:[%s5741_s9 + $0x20] sm:$0xff] }
  0x2e   :  { %318 = vmatpush1.bf16.msra.mxu0 %v4579_v59  ;;  %v388_v59 = vld [vmem:[%s5741_s9 + $0x28] sm:$0xff] }
  0x2f   :  { %319 = vmatprep.subr.bf16.mxu0 %v4580_v60  ;;  %v4938_v60 = vpack.c.bf16 %v4916_v50, %v4914_v49 }
  0x31   :  { %5821 = vst [vmem:[#allocation14_spill] sm:$0xff] %v4938_v60 }
  0x32   :  { %320 = vmatpush1.bf16.msra.mxu0 %v4582_v63  ;;  %v428_v63 = vand.u32 4294901760, %v387_v58 }
  0x33   :  { %4190 = vmatprep.subr.bf16.mxu0 %v4842_v0 }
  0x81   :  { %v4845_v1 = vpop.permute.xlu1 %100 }
  0x82   :  { %5811 = vst [vmem:[#allocation4_spill] sm:$0xff] %v4845_v1  ;;  %v4847_v2 = vpop.permute.xlu0 %67  ;;  %v118_v3 = vmul.f32 %v4845_v1, %v4728_v20 }
  0x83   :  { %5812 = vst [vmem:[#allocation5_spill] sm:$0xff] %v4847_v2  ;;  %v85_v16 = vmul.f32 %v4847_v2, %v4735_v23 }
  0x85   :  { %v4851_v5 = vpop.permute.xlu1 %105 }
  0x86   :  { %5813 = vst [vmem:[#allocation6_spill] sm:$0xff] %v4851_v5  ;;  %v4853_v6 = vpop.permute.xlu0 %72  ;;  %v119_v7 = vmul.f32 %v4851_v5, %v4742_v26 }
  0x87   :  { %5814 = vst [vmem:[#allocation7_spill] sm:$0xff] %v4853_v6  ;;  %v86_v17 = vmul.f32 %v4853_v6, %v4746_v28 }
  0x88   :  { %v144_v8 = vpack.c.bf16 %v119_v7, %v118_v3  ;;  %v431_v3 = vand.u32 4294901760, %v388_v59  ;;  %v4942_v7 = vsub.f32 %v403_v51, %v476_v56 }
  0x89   :  { %v4857_v9 = vpop.permute.xlu1 %82 }
  0x8a   :  { %5815 = vst [vmem:[#allocation8_spill] sm:$0xff] %v4857_v9  ;;  %v4859_v10 = vpop.permute.xlu0 %77  ;;  %3536 = vmatprep.mubr.msk.bf16.mxu0 %vm138_vm2, %v144_v8  ;;  %v88_v18 = vmul.f32 %v4857_v9, %v4756_v31  ;;  %v383_v31 = vld [vmem:[%s5741_s9] sm:$0xff]  ;;  %v4944_v8 = vsub.f32 %v404_v52, %v479_v57  ;;  %v5006_v43 = vpack.c.bf16 %v431_v3, %v428_v63  ;;  %v413_v9 = vld [vmem:[%s5741_s9 + $0xf0] sm:$0xff] }
  0x8b   :  { %5816 = vst [vmem:[#allocation9_spill] sm:$0xff] %v4859_v10  ;;  %v87_v19 = vmul.f32 %v4859_v10, %v4760_v32  ;;  %v384_v32 = vld [vmem:[%s5741_s9 + $0x8] sm:$0xff]  ;;  %v416_v34 = vand.u32 4294901760, %v383_v31 }
  0x8c   :  { %v419_v35 = vand.u32 4294901760, %v384_v32 }
  0x8d   :  { %v4862_v11 = vpop.permute.xlu1 %115 }
  0x8e   :  { %5817 = vst [vmem:[#allocation10_spill] sm:$0xff] %v4862_v11  ;;  %v4864_v12 = vpop.permute.xlu0 %110  ;;  %v121_v13 = vmul.f32 %v4862_v11, %v4770_v36  ;;  %v4889_v36 = vsub.f32 %v383_v31, %v416_v34  ;;  %v4924_v53 = vpack.c.bf16 %v419_v35, %v416_v34  ;;  %v408_v31 = vld [vmem:[%s5741_s9 + $0xc8] sm:$0xff] }
  0x8f   :  { %5818 = vst [vmem:[#allocation11_spill] sm:$0xff] %v4864_v12  ;;  %v120_v14 = vmul.f32 %v4864_v12, %v4774_v37  ;;  %v4891_v37 = vsub.f32 %v384_v32, %v419_v35  ;;  %v491_v35 = vand.u32 4294901760, %v408_v31 }
  0x90   :  { %4128 = vmatpush3.bf16.msra.mxu1 %v4924_v53 }
  0x91   :  { %v146_v15 = vpack.c.bf16 %v121_v13, %v120_v14  ;;  %v4544_v20 = vpop.permute.xlu1 %4543  ;;  %v4907_v44 = vpack.c.bf16 %v4891_v37, %v4889_v36  ;;  %v4947_v13 = vsub.f32 %v387_v58, %v428_v63  ;;  %v4949_v14 = vsub.f32 %v388_v59, %v431_v3  ;;  %v410_v58 = vld [vmem:[%s5741_s9 + $0xd8] sm:$0xff] }
  0x92   :  { %v4539_v21 = vpop.permute.xlu0 %4538  ;;  %v4546_v22 = vunpack.i.h.bf16 %v4544_v20  ;;  %v4545_v24 = vunpack.i.l.bf16 %v4544_v20  ;;  %v4965_v20 = vpack.c.bf16 %v4944_v8, %v4942_v7  ;;  %v5014_v51 = vsub.f32 %v408_v31, %v491_v35 }
  0x93   :  { %v4541_v25 = vunpack.i.h.bf16 %v4539_v21  ;;  %v4540_v26 = vunpack.i.l.bf16 %v4539_v21  ;;  %5819 = vst [vmem:[#allocation12_spill] sm:$0xff] %v4907_v44  ;;  %v389_v21 = vld [vmem:[%s5741_s9 + $0x30] sm:$0xff]  ;;  %v497_v3 = vand.u32 4294901760, %v410_v58 }
  0x94   :  { %v141_v23 = vsel %vm138_vm2, %v87_v19, %v4545_v24  ;;  %v142_v28 = vsel %vm138_vm2, %v88_v18, %v4546_v22  ;;  %v4959_v18 = vpack.c.bf16 %v425_v46, %v422_v45  ;;  %v4961_v19 = vpack.c.bf16 %v479_v57, %v476_v56  ;;  %5822 = vst [vmem:[#allocation15_spill] sm:$0xff] %v4965_v20  ;;  %v390_v22 = vld [vmem:[%s5741_s9 + $0x38] sm:$0xff]  ;;  %v409_v57 = vld [vmem:[%s5741_s9 + $0xd0] sm:$0xff] }
  0x95   :  { %v139_v27 = vsel %vm138_vm2, %v85_v16, %v4540_v26  ;;  %v140_v29 = vsel %vm138_vm2, %v86_v17, %v4541_v25  ;;  %v145_v33 = vpack.c.bf16 %v142_v28, %v141_v23  ;;  %v406_v16 = vld [vmem:[%s5741_s9 + $0xb8] sm:$0xff]  ;;  %v4957_v17 = vpack.c.bf16 %v473_v41, %v470_v40 }
  0x96   :  { %v143_v30 = vpack.c.bf16 %v140_v29, %v139_v27  ;;  %v4975_v24 = vpack.c.bf16 %v4949_v14, %v4947_v13  ;;  %v485_v26 = vand.u32 4294901760, %v406_v16  ;;  %v434_v27 = vand.u32 4294901760, %v389_v21 }
  0x97   :  { %4130 = vmatprep.subr.bf16.mxu1 %v4957_v17  ;;  %v437_v29 = vand.u32 4294901760, %v390_v22  ;;  %v440_v41 = vand.u32 4294901760, %v391_v38  ;;  %v5019_v56 = vsub.f32 %v392_v39, %v443_v42  ;;  %v494_v63 = vand.u32 4294901760, %v409_v57 }
  0x98   :  { %330 = vmatmul.mubr.bf16.vlgmr.msra.gmra.mrb[0].mxu0 %v143_v30  ;;  %5823 = vst [vmem:[#allocation16_spill] sm:$0xff] %v4975_v24  ;;  %4132 = vmatpush3.bf16.msra.mxu1 %v4959_v18  ;;  %v4983_v28 = vsub.f32 %v406_v16, %v485_v26  ;;  %v4985_v30 = vsub.f32 %v389_v21, %v434_v27  ;;  %v394_v16 = vld [vmem:[%s5741_s9 + $0x58] sm:$0xff] }
  0x99   :  { %3537 = vmatprep.mubr.msk.bf16.mxu0 %vm138_vm2, %v146_v15  ;;  %4192 = vmatpush3.bf16.msra.mxu0 %v4907_v44  ;;  %v405_v15 = vld [vmem:[%s5741_s9 + $0xb0] sm:$0xff]  ;;  %v4993_v32 = vsub.f32 %v390_v22, %v437_v29  ;;  %v5017_v52 = vsub.f32 %v391_v38, %v440_v41  ;;  %v5046_v38 = vsub.f32 %v409_v57, %v494_v63  ;;  %v395_v57 = vld [vmem:[%s5741_s9 + $0x60] sm:$0xff] }
  0x9a   :  { %4194 = vmatprep.subr.bf16.mxu0 %v4928_v55  ;;  %v482_v25 = vand.u32 4294901760, %v405_v15  ;;  %4134 = vmatprep.subr.bf16.mxu1 %v4961_v19  ;;  %v5048_v39 = vsub.f32 %v410_v58, %v497_v3  ;;  %v396_v58 = vld [vmem:[%s5741_s9 + $0x68] sm:$0xff]  ;;  %v5086_v44 = vpack.c.bf16 %v443_v42, %v440_v41  ;;  %v397_v42 = vld [vmem:[%s5741_s9 + $0x70] sm:$0xff] }
  0x9b   :  { %v5010_v45 = vpack.c.bf16 %v4993_v32, %v4985_v30  ;;  %v5041_v21 = vpack.c.bf16 %v5019_v56, %v5017_v52 }
  0x9c   :  { %v4981_v23 = vsub.f32 %v405_v15, %v482_v25  ;;  %4136 = vmatpush3.bf16.msra.mxu1 %v5006_v43  ;;  %v393_v15 = vld [vmem:[%s5741_s9 + $0x50] sm:$0xff]  ;;  %v5043_v31 = vpack.c.bf16 %v485_v26, %v482_v25  ;;  %v412_v25 = vld [vmem:[%s5741_s9 + $0xe8] sm:$0xff]  ;;  %v5066_v26 = vpack.c.bf16 %v5048_v39, %v5046_v38 }
  0x9d   :  { %4196 = vmatpush3.bf16.msra.mxu0 %v4938_v60  ;;  %5825 = vst [vmem:[#allocation18_spill] sm:$0xff] %v5010_v45  ;;  %5827 = vst [vmem:[#allocation20_spill] sm:$0xff] %v5041_v21  ;;  %v446_v22 = vand.u32 4294901760, %v393_v15 }
  0x9e   :  { %4198 = vmatprep.subr.bf16.mxu0 %v4965_v20  ;;  %v5004_v40 = vpack.c.bf16 %v4983_v28, %v4981_v23  ;;  %v411_v20 = vld [vmem:[%s5741_s9 + $0xe0] sm:$0xff]  ;;  %4138 = vmatprep.subr.bf16.mxu1 %v5043_v31  ;;  %5828 = vst [vmem:[#allocation21_spill] sm:$0xff] %v5066_v26 }
  0xa0   :  { %340 = vmatmul.mubr.bf16.gmra.mrb[4].mxu0 %v145_v33  ;;  %v407_v33 = vld [vmem:[%s5741_s9 + $0xc0] sm:$0xff]  ;;  %5824 = vst [vmem:[#allocation17_spill] sm:$0xff] %v5004_v40 }
  0xa1   :  { %4200 = vmatpush3.bf16.msra.mxu0 %v4975_v24  ;;  %v488_v34 = vand.u32 4294901760, %v407_v33 }
  0xa2   :  { %4202 = vmatprep.subr.bf16.mxu0 %v5004_v40  ;;  %v5052_v40 = vsub.f32 %v393_v15, %v446_v22 }
  0xa3   :  { %v5012_v46 = vsub.f32 %v407_v33, %v488_v34  ;;  %v449_v33 = vand.u32 4294901760, %v394_v16 }
  0xa5   :  { %4204 = vmatpush3.bf16.msra.mxu0 %v5010_v45  ;;  %v5031_v59 = vpack.c.bf16 %v5014_v51, %v5012_v46  ;;  %v5050_v45 = vpack.c.bf16 %v437_v29, %v434_v27  ;;  %v5054_v24 = vsub.f32 %v394_v16, %v449_v33  ;;  %v500_v27 = vand.u32 4294901760, %v411_v20 }
  0xa6   :  { %v503_v29 = vand.u32 4294901760, %v412_v25  ;;  %v452_v16 = vand.u32 4294901760, %v395_v57  ;;  %v5122_v5 = vpack.c.bf16 %v449_v33, %v446_v22 }
  0xa7   :  { %5826 = vst [vmem:[#allocation19_spill] sm:$0xff] %v5031_v59  ;;  %4206 = vmatprep.subr.bf16.mxu0 %v5031_v59  ;;  %4140 = vmatpush3.bf16.msra.mxu1 %v5050_v45  ;;  %v5077_v15 = vpack.c.bf16 %v5054_v24, %v5052_v40  ;;  %v5079_v59 = vpack.c.bf16 %v491_v35, %v488_v34  ;;  %v414_v34 = vld [vmem:[%s5741_s9 + $0xf8] sm:$0xff]  ;;  %v506_v35 = vand.u32 4294901760, %v413_v9 }
  0xa8   :  { %v5082_v60 = vsub.f32 %v411_v20, %v500_v27  ;;  %v5084_v55 = vsub.f32 %v412_v25, %v503_v29  ;;  %v5088_v0 = vsub.f32 %v395_v57, %v452_v16  ;;  %v509_v41 = vand.u32 4294901760, %v414_v34  ;;  %v398_v25 = vld [vmem:[%s5741_s9 + $0x78] sm:$0xff]  ;;  %5833 = vst [vmem:[#allocation26_spill] sm:$0xff] %v5122_v5  ;;  %s4613_s9 = smov 8  }
  0xa9   :  { %4208 = vmatpush3.bf16.msra.mxu0 %v5041_v21  ;;  %5829 = vst [vmem:[#allocation22_spill] sm:$0xff] %v5077_v15  ;;  %v455_v21 = vand.u32 4294901760, %v396_v58  ;;  %4142 = vmatprep.subr.bf16.mxu1 %v5079_v59  ;;  %v5118_v11 = vsub.f32 %v413_v9, %v506_v35 }
  0xaa   :  { %4210 = vmatprep.subr.bf16.mxu0 %v5066_v26  ;;  %v5102_v20 = vpack.c.bf16 %v5084_v55, %v5082_v60  ;;  %v5115_v26 = vpack.c.bf16 %v497_v3, %v494_v63  ;;  %v5120_v12 = vsub.f32 %v414_v34, %v509_v41  ;;  %v5139_v3 = vpack.c.bf16 %v503_v29, %v500_v27 }
  0xab   :  { %v5090_v10 = vsub.f32 %v396_v58, %v455_v21  ;;  %4144 = vmatpush3.bf16.msra.mxu1 %v5086_v44  ;;  %v458_v58 = vand.u32 4294901760, %v397_v42  ;;  %v5141_v22 = vpack.c.bf16 %v455_v21, %v452_v16  ;;  %v5143_v33 = vpack.c.bf16 %v509_v41, %v506_v35 }
  0xac   :  { %5830 = vst [vmem:[#allocation23_spill] sm:$0xff] %v5102_v20  ;;  %5832 = vst [vmem:[#allocation25_spill] sm:$0xff] %v5115_v26  ;;  %4146 = vmatprep.subr.bf16.mxu1 %v5115_v26  ;;  %v5132_v63 = vpack.c.bf16 %v5120_v12, %v5118_v11  ;;  %v642_v34 = vand.u32 4294901760, %v4833_v61  ;;  %v656_v16 = vand.u32 4294901760, %v4909_v47  ;;  %v663_v35 = vand.u32 4294901760, %v4911_v48 }
  0xad   :  { %4212 = vmatpush3.bf16.msra.mxu0 %v5077_v15  ;;  %v5113_v57 = vpack.c.bf16 %v5090_v10, %v5088_v0  ;;  %v461_v15 = vand.u32 4294901760, %v398_v25  ;;  %v5124_v1 = vsub.f32 %v397_v42, %v458_v58  ;;  %5836 = vst [vmem:[#allocation29_spill] sm:$0xff] %v5139_v3  ;;  %5837 = vst [vmem:[#allocation30_spill] sm:$0xff] %v5141_v22  ;;  %v649_v42 = vand.u32 4294901760, %v4835_v62 }
  0xae   :  { %4214 = vmatprep.subr.bf16.mxu0 %v5102_v20  ;;  %5834 = vst [vmem:[#allocation27_spill] sm:$0xff] %v5132_v63  ;;  %5838 = vst [vmem:[#allocation31_spill] sm:$0xff] %v5143_v33  ;;  %v643_v41 = vsub.f32 %v4833_v61, %v642_v34  ;;  %v5170_v2 = vpack.c.bf16 %v663_v35, %v656_v16  ;;  %v712_v26 = vand.u32 4294901760, %v5046_v38 }
  0xaf   :  { %5831 = vst [vmem:[#allocation24_spill] sm:$0xff] %v5113_v57  ;;  %v5126_v6 = vsub.f32 %v398_v25, %v461_v15  ;;  %4148 = vmatpush3.bf16.msra.mxu1 %v5122_v5  ;;  %v530_v25 = vand.u32 4294901760, %v4889_v36  ;;  %v5152_v27 = vpack.c.bf16 %v461_v15, %v458_v58  ;;  %v5155_v21 = vpack.c.bf16 %v649_v42, %v642_v34 }
  0xb0   :  { %4150 = vmatprep.subr.bf16.mxu1 %v5139_v3  ;;  %v544_v15 = vand.u32 4294901760, %v4914_v49  ;;  %v551_v58 = vand.u32 4294901760, %v4916_v50  ;;  %v705_v5 = vand.u32 4294901760, %v5014_v51 }
  0xb1   :  { %4216 = vmatpush3.bf16.msra.mxu0 %v5113_v57  ;;  %v5137_v9 = vpack.c.bf16 %v5126_v6, %v5124_v1  ;;  %v537_v57 = vand.u32 4294901760, %v4891_v37  ;;  %5839 = vst [vmem:[#allocation32_spill] sm:$0xff] %v5152_v27  ;;  %5840 = vst [vmem:[#allocation33_spill] sm:$0xff] %v5155_v21 }
  0xb2   :  { %4218 = vmatprep.subr.bf16.mxu0 %v5132_v63  ;;  %v531_v63 = vsub.f32 %v4889_v36, %v530_v25  ;;  %v657_v36 = vsub.f32 %v4909_v47, %v656_v16 }
  0xb3   :  { %5835 = vst [vmem:[#allocation28_spill] sm:$0xff] %v5137_v9  ;;  %4152 = vmatpush3.bf16.msra.mxu1 %v5141_v22  ;;  %v5157_v29 = vpack.c.bf16 %v537_v57, %v530_v25  ;;  %v538_v20 = vsub.f32 %v4891_v37, %v537_v57  ;;  %v558_v37 = vand.u32 4294901760, %v4947_v13  ;;  %v565_v57 = vand.u32 4294901760, %v4949_v14 }
  0xb4   :  { %4154 = vmatprep.subr.bf16.mxu1 %v5143_v33  ;;  %v5172_v33 = vpack.c.bf16 %v551_v58, %v544_v15  ;;  %v532_v22 = vand.u32 4294901760, %v531_v63 }
  0xb5   :  { %4220 = vmatpush3.bf16.msra.mxu0 %v5137_v9  ;;  %v650_v9 = vsub.f32 %v4835_v62, %v649_v42  ;;  %v539_v61 = vand.u32 4294901760, %v538_v20  ;;  %v670_v62 = vand.u32 4294901760, %v4942_v7  ;;  %v677_v42 = vand.u32 4294901760, %v4944_v8 }
  0xb6   :  { %4254 = vmatprep.subr.bf16.mxu0 %v5155_v21  ;;  %v644_v21 = vand.u32 4294901760, %v643_v41  ;;  %v545_v20 = vsub.f32 %v4914_v49, %v544_v15  ;;  %v5189_v41 = vpack.c.bf16 %v565_v57, %v558_v37 }
  0xb7   :  { %4156 = vmatpush3.bf16.msra.mxu1 %v5152_v27  ;;  %v651_v4 = vand.u32 4294901760, %v650_v9  ;;  %v5179_v25 = vpack.c.bf16 %v539_v61, %v532_v22  ;;  %v664_v9 = vsub.f32 %v4911_v48, %v663_v35  ;;  %v5185_v63 = vpack.c.bf16 %v677_v42, %v670_v62 }
  0xb8   :  { %v546_v22 = vand.u32 4294901760, %v545_v20  ;;  %v684_v61 = vand.u32 4294901760, %v4981_v23  ;;  %v691_v27 = vand.u32 4294901760, %v4983_v28  ;;  %v572_v48 = vand.u32 4294901760, %v4985_v30 }
  0xb9   :  { %v5174_v34 = vpack.c.bf16 %v651_v4, %v644_v21  ;;  %v658_v4 = vand.u32 4294901760, %v657_v36  ;;  %v552_v21 = vsub.f32 %v4916_v50, %v551_v58  ;;  %v665_v47 = vand.u32 4294901760, %v664_v9 }
  0xba   :  { %v579_v35 = vand.u32 4294901760, %v4993_v32  ;;  %v671_v36 = vsub.f32 %v4942_v7, %v670_v62  ;;  %v5200_v50 = vpack.c.bf16 %v691_v27, %v684_v61  ;;  %v678_v15 = vsub.f32 %v4944_v8, %v677_v42 }
  0xbb   :  { %5841 = vst [vmem:[#allocation34_spill] sm:$0xff] %v5174_v34  ;;  %4158 = vmatprep.subr.bf16.mxu1 %v5174_v34  ;;  %v553_v16 = vand.u32 4294901760, %v552_v21  ;;  %v5193_v3 = vpack.c.bf16 %v665_v47, %v658_v4  ;;  %v559_v58 = vsub.f32 %v4947_v13, %v558_v37  ;;  %v566_v4 = vsub.f32 %v4949_v14, %v565_v57 }
  0xbc   :  { %v5204_v9 = vpack.c.bf16 %v579_v35, %v572_v48  ;;  %v672_v20 = vand.u32 4294901760, %v671_v36  ;;  %v679_v21 = vand.u32 4294901760, %v678_v15  ;;  %v698_v34 = vand.u32 4294901760, %v5012_v46 }
  0xbd   :  { %v5198_v49 = vpack.c.bf16 %v553_v16, %v546_v22  ;;  %v560_v47 = vand.u32 4294901760, %v559_v58  ;;  %v567_v7 = vand.u32 4294901760, %v566_v4  ;;  %v586_v62 = vand.u32 4294901760, %v5017_v52 }
  0xbe   :  { %5842 = vst [vmem:[#allocation35_spill] sm:$0xff] %v5204_v9  ;;  %v593_v22 = vand.u32 4294901760, %v5019_v56  ;;  %v685_v8 = vsub.f32 %v4981_v23, %v684_v61  ;;  %v5212_v42 = vpack.c.bf16 %v679_v21, %v672_v20  ;;  %v5214_v13 = vpack.c.bf16 %v705_v5, %v698_v34 }
  0xbf   :  { %v692_v37 = vsub.f32 %v4983_v28, %v691_v27  ;;  %v573_v14 = vsub.f32 %v4985_v30, %v572_v48  ;;  %v5218_v57 = vpack.c.bf16 %v567_v7, %v560_v47  ;;  %v580_v15 = vsub.f32 %v4993_v32, %v579_v35 }
  0xc0   :  { %5843 = vst [vmem:[#allocation36_spill] sm:$0xff] %v5214_v13  ;;  %v5220_v16 = vpack.c.bf16 %v593_v22, %v586_v62  ;;  %v686_v36 = vand.u32 4294901760, %v685_v8  ;;  %v719_v23 = vand.u32 4294901760, %v5048_v39  ;;  %v600_v20 = vand.u32 4294901760, %v5052_v40 }
  0xc1   :  { %v693_v58 = vand.u32 4294901760, %v692_v37  ;;  %v574_v4 = vand.u32 4294901760, %v573_v14  ;;  %v581_v61 = vand.u32 4294901760, %v580_v15  ;;  %v607_v28 = vand.u32 4294901760, %v5054_v24 }
  0xc2   :  { %5844 = vst [vmem:[#allocation37_spill] sm:$0xff] %v5220_v16  ;;  %v699_v30 = vsub.f32 %v5012_v46, %v698_v34  ;;  %v5230_v48 = vpack.c.bf16 %v719_v23, %v712_v26  ;;  %v706_v21 = vsub.f32 %v5014_v51, %v705_v5  ;;  %v587_v32 = vsub.f32 %v5017_v52, %v586_v62 }
  0xc3   :  { %v5228_v27 = vpack.c.bf16 %v693_v58, %v686_v36  ;;  %v5234_v35 = vpack.c.bf16 %v581_v61, %v574_v4  ;;  %v5236_v47 = vpack.c.bf16 %v607_v28, %v600_v20  ;;  %v594_v8 = vsub.f32 %v5019_v56, %v593_v22 }
  0xc4   :  { %5845 = vst [vmem:[#allocation38_spill] sm:$0xff] %v5230_v48  ;;  %v700_v7 = vand.u32 4294901760, %v699_v30  ;;  %v707_v37 = vand.u32 4294901760, %v706_v21  ;;  %v588_v14 = vand.u32 4294901760, %v587_v32  ;;  %v726_v15 = vand.u32 4294901760, %v5082_v60 }
  0xc5   :  { %5846 = vst [vmem:[#allocation39_spill] sm:$0xff] %v5236_v47  ;;  %v733_v46 = vand.u32 4294901760, %v5084_v55  ;;  %v595_v34 = vand.u32 4294901760, %v594_v8  ;;  %v614_v36 = vand.u32 4294901760, %v5088_v0  ;;  %v621_v5 = vand.u32 4294901760, %v5090_v10 }
  0xc6   :  { %v713_v51 = vsub.f32 %v5046_v38, %v712_v26  ;;  %v5244_v52 = vpack.c.bf16 %v707_v37, %v700_v7  ;;  %v720_v58 = vsub.f32 %v5048_v39, %v719_v23  ;;  %v601_v56 = vsub.f32 %v5052_v40, %v600_v20 }
  0xc7   :  { %v5246_v62 = vpack.c.bf16 %v733_v46, %v726_v15  ;;  %v5250_v22 = vpack.c.bf16 %v595_v34, %v588_v14  ;;  %v5252_v4 = vpack.c.bf16 %v621_v5, %v614_v36  ;;  %v608_v30 = vsub.f32 %v5054_v24, %v607_v28 }
  0xc8   :  { %v714_v61 = vand.u32 4294901760, %v713_v51  ;;  %v721_v21 = vand.u32 4294901760, %v720_v58  ;;  %v602_v32 = vand.u32 4294901760, %v601_v56  ;;  %v740_v8 = vand.u32 4294901760, %v5118_v11 }
  0xc9   :  { %5847 = vst [vmem:[#allocation40_spill] sm:$0xff] %v5246_v62  ;;  %5848 = vst [vmem:[#allocation41_spill] sm:$0xff] %v5252_v4  ;;  %v747_v38 = vand.u32 4294901760, %v5120_v12  ;;  %v609_v26 = vand.u32 4294901760, %v608_v30  ;;  %v628_v7 = vand.u32 4294901760, %v5124_v1  ;;  %v635_v39 = vand.u32 4294901760, %v5126_v6 }
  0xca   :  { %v727_v40 = vsub.f32 %v5082_v60, %v726_v15  ;;  %v5260_v23 = vpack.c.bf16 %v721_v21, %v714_v61  ;;  %v734_v37 = vsub.f32 %v5084_v55, %v733_v46  ;;  %v615_v24 = vsub.f32 %v5088_v0, %v614_v36 }
  0xcb   :  { %v5262_v20 = vpack.c.bf16 %v747_v38, %v740_v8  ;;  %v5266_v28 = vpack.c.bf16 %v609_v26, %v602_v32  ;;  %v5268_v14 = vpack.c.bf16 %v635_v39, %v628_v7  ;;  %v622_v51 = vsub.f32 %v5090_v10, %v621_v5 }
  0xcc   :  { %v728_v34 = vand.u32 4294901760, %v727_v40  ;;  %v735_v58 = vand.u32 4294901760, %v734_v37  ;;  %v616_v56 = vand.u32 4294901760, %v615_v24  ;;  %v741_v30 = vsub.f32 %v5118_v11, %v740_v8 }
  0xcd   :  { %5849 = vst [vmem:[#allocation42_spill] sm:$0xff] %v5262_v20  ;;  %5850 = vst [vmem:[#allocation43_spill] sm:$0xff] %v5268_v14  ;;  %v748_v60 = vsub.f32 %v5120_v12, %v747_v38  ;;  %v623_v15 = vand.u32 4294901760, %v622_v51  ;;  %v629_v61 = vsub.f32 %v5124_v1, %v628_v7  ;;  %v636_v55 = vsub.f32 %v5126_v6, %v635_v39 }
  0xce   :  { %v5275_v46 = vpack.c.bf16 %v735_v58, %v728_v34  ;;  %v742_v0 = vand.u32 4294901760, %v741_v30 }
  0xcf   :  { %v749_v36 = vand.u32 4294901760, %v748_v60  ;;  %v5277_v21 = vpack.c.bf16 %v623_v15, %v616_v56  ;;  %v630_v32 = vand.u32 4294901760, %v629_v61  ;;  %v637_v26 = vand.u32 4294901760, %v636_v55 }
  0xd1   :  { %v5279_v10 = vpack.c.bf16 %v749_v36, %v742_v0  ;;  %v5281_v5 = vpack.c.bf16 %v637_v26, %v630_v32 }
 0x16b   :  { %v5283_v11 = vpop.f32.mrb[0].mxu0 }
 0x16c   :  { %v5285_v12 = vpop.f32.mrb[1].mxu0  ;;  %v361_v1 = vmul.f32 %v5283_v11, %v5283_v11 }
 0x16d   :  { %5851 = vst [vmem:[#allocation44_spill] sm:$0xff] %v5285_v12  ;;  %v5287_v8 = vpop.f32.mrb[2].mxu0 }
 0x16e   :  { %v362_v6 = vmul.f32 %v5287_v8, %v5287_v8  ;;  %v365_v38 = vadd.f32 %v5287_v8, %v5283_v11  ;;  %v5295_v7 = vpop.f32.mrb[3].mxu0 }
 0x16f   :  { %5852 = vst [vmem:[#allocation45_spill] sm:$0xff] %v5295_v7 }
 0x170   :  { %v374_v39 = vadd.f32 %v362_v6, %v361_v1 }
 0x173   :  { %v5297_v40 = vpop.f32.mrb[4].mxu0 }
 0x174   :  { %v363_v37 = vmul.f32 %v5297_v40, %v5297_v40  ;;  %v366_v24 = vadd.f32 %v365_v38, %v5297_v40  ;;  %v5302_v34 = vpop.f32.mrb[5].mxu0 }
 0x175   :  { %5853 = vst [vmem:[#allocation46_spill] sm:$0xff] %v5302_v34  ;;  %v5304_v51 = vpop.f32.mrb[6].mxu0 }
 0x176   :  { %v375_v58 = vadd.f32 %v374_v39, %v363_v37  ;;  %v364_v56 = vmul.f32 %v5304_v51, %v5304_v51  ;;  %v367_v30 = vadd.f32 %v366_v24, %v5304_v51  ;;  %v5309_v60 = vpop.f32.mrb[7].mxu0 }
 0x177   :  { %5854 = vst [vmem:[#allocation47_spill] sm:$0xff] %v5309_v60 }
 0x178   :  { %v368_v15 = vrot.slane %v367_v30, 4  ;;  %v376_v61 = vadd.f32 %v375_v58, %v364_v56 }
 0x17a   :  { %v369_v55 = vadd.f32 %v368_v15, %v367_v30  ;;  %v377_v0 = vrot.slane %v376_v61, 4 }
 0x17c   :  { %v370_v36 = vrot.slane %v369_v55, 2  ;;  %v378_v32 = vadd.f32 %v377_v0, %v376_v61  ;;  %v5857_v0 = vld [vmem:[#allocation29_spill] sm:$0xff] }
 0x17e   :  { %v371_v26 = vadd.f32 %v370_v36, %v369_v55  ;;  %v379_v1 = vrot.slane %v378_v32, 2  ;;  %v5856_v55 = vld [vmem:[#allocation26_spill] sm:$0xff] }
 0x17f   :  { %v5858_v36 = vld [vmem:[#allocation30_spill] sm:$0xff] }
 0x180   :  { %v372_v6 = vrot.slane %v371_v26, 1  ;;  %v380_v38 = vadd.f32 %v379_v1, %v378_v32  ;;  %v5859_v32 = vld [vmem:[#allocation31_spill] sm:$0xff] }
 0x182   :  { %v373_v34 = vadd.f32 %v372_v6, %v371_v26  ;;  %v381_v7 = vrot.slane %v380_v38, 1  ;;  %v5860_v26 = vld [vmem:[#allocation32_spill] sm:$0xff] }
 0x184   :  { %v5311_v39 = vand.u32 4294901760, %v373_v34  ;;  %v382_v37 = vadd.f32 %v381_v7, %v380_v38 }
 0x186   :  { %v5314_v12 = vsub.f32 %v373_v34, %v5311_v39  ;;  %v5316_v24 = vand.u32 4294901760, %v382_v37 }
 0x188   :  { %v512_v58 = vsub.f32 %v382_v37, %v5316_v24  ;;  %v519_v56 = vand.u32 4294901760, %v5314_v12 }
 0x18a   :  { %889 = vmatprep.mubr.f32.mxu0 %v512_v58  ;;  %v513_v30 = vand.u32 4294901760, %v512_v58  ;;  %v520_v15 = vsub.f32 %v5314_v12, %v519_v56 }
 0x18b   :  { %892 = vmatmul.mubr.f32.vlgmr.msra.gmra.mrb[8].mxu0 %v5314_v12  ;;  %v5855_v12 = vld [vmem:[#allocation25_spill] sm:$0xff] }
 0x18c   :  { %4256 = vmatpush3.bf16.msra.mxu0 %v5157_v29  ;;  %1166 = vmatprep.mubr.f32.mxu0 %v5316_v24  ;;  %v514_v7 = vsub.f32 %v512_v58, %v513_v30  ;;  %v521_v61 = vand.u32 4294901760, %v520_v15 }
 0x18d   :  { %4258 = vmatprep.subr.bf16.mxu0 %v5170_v2 }
 0x18e   :  { %v515_v34 = vand.u32 4294901760, %v514_v7 }
 0x190   :  { %4260 = vmatpush3.bf16.msra.mxu0 %v5172_v33  ;;  %516 = vmatprep.mubr.f32.mxu1 %v515_v34 }
 0x191   :  { %522 = vmatmul.mubr.f32.vlgmr.msra.gmra.mrb[0].mxu1 %v521_v61  ;;  %4262 = vmatprep.subr.bf16.mxu0 %v5185_v63 }
 0x192   :  { %4160 = vmatpush3.bf16.msra.mxu1 %v5179_v25  ;;  %752 = vmatprep.mubr.f32.mxu1 %v5316_v24 }
 0x193   :  { %4162 = vmatprep.subr.bf16.mxu1 %v5193_v3 }
 0x194   :  { %4264 = vmatpush3.bf16.msra.mxu0 %v5189_v41 }
 0x195   :  { %4266 = vmatprep.subr.bf16.mxu0 %v5200_v50 }
 0x196   :  { %4164 = vmatpush3.bf16.msra.mxu1 %v5198_v49 }
 0x197   :  { %4166 = vmatprep.subr.bf16.mxu1 %v5212_v42 }
 0x198   :  { %4268 = vmatpush3.bf16.msra.mxu0 %v5204_v9 }
 0x199   :  { %4270 = vmatprep.subr.bf16.mxu0 %v5214_v13 }
 0x19a   :  { %4168 = vmatpush3.bf16.msra.mxu1 %v5218_v57 }
 0x19b   :  { %4170 = vmatprep.subr.bf16.mxu1 %v5228_v27 }
 0x19c   :  { %4272 = vmatpush3.bf16.msra.mxu0 %v5220_v16 }
 0x19d   :  { %4274 = vmatprep.subr.bf16.mxu0 %v5230_v48 }
 0x19e   :  { %4172 = vmatpush3.bf16.msra.mxu1 %v5234_v35 }
 0x19f   :  { %4174 = vmatprep.subr.bf16.mxu1 %v5244_v52 }
 0x1a0   :  { %4276 = vmatpush3.bf16.msra.mxu0 %v5236_v47 }
 0x1a1   :  { %4278 = vmatprep.subr.bf16.mxu0 %v5246_v62 }
 0x1a2   :  { %4176 = vmatpush3.bf16.msra.mxu1 %v5250_v22 }
 0x1a3   :  { %4178 = vmatprep.subr.bf16.mxu1 %v5260_v23 }
 0x1a4   :  { %4280 = vmatpush3.bf16.msra.mxu0 %v5252_v4 }
 0x1a5   :  { %4282 = vmatprep.subr.bf16.mxu0 %v5262_v20 }
 0x1a6   :  { %4180 = vmatpush3.bf16.msra.mxu1 %v5266_v28 }
 0x1a7   :  { %4182 = vmatprep.subr.bf16.mxu1 %v5275_v46 }
 0x1a8   :  { %4284 = vmatpush3.bf16.msra.mxu0 %v5268_v14 }
 0x1aa   :  { %4184 = vmatpush3.bf16.msra.mxu1 %v5277_v21 }
 0x1ab   :  { %1168 = vmatmul.mubr.f32.vlgmr.msra.gmra.mrb[10].mxu0 %v5311_v39  ;;  %4186 = vmatprep.subr.bf16.mxu1 %v5279_v10 }
 0x1ae   :  { %4188 = vmatpush3.bf16.msra.mxu1 %v5281_v5 }
 0x1af   :  { %4222 = vmatprep.subr.bf16.mxu1 %v4812_v54 }
 0x1b1   :  { %754 = vmatmul.mubr.f32.vlgmr.msra.gmra.mrb[2].mxu1 %v5311_v39 }
 0x1b2   :  { %4224 = vmatpush3.bf16.msra.mxu1 %v4924_v53  ;;  %996 = vmatprep.mubr.f32.mxu1 %v513_v30 }
 0x1b3   :  { %4226 = vmatprep.subr.bf16.mxu1 %v4957_v17 }
 0x1b6   :  { %4228 = vmatpush3.bf16.msra.mxu1 %v4959_v18 }
 0x1b7   :  { %4230 = vmatprep.subr.bf16.mxu1 %v4961_v19 }
 0x1ba   :  { %4232 = vmatpush3.bf16.msra.mxu1 %v5006_v43 }
 0x1bb   :  { %4234 = vmatprep.subr.bf16.mxu1 %v5043_v31 }
 0x1be   :  { %4236 = vmatpush3.bf16.msra.mxu1 %v5050_v45 }
 0x1bf   :  { %4238 = vmatprep.subr.bf16.mxu1 %v5079_v59 }
 0x1c2   :  { %4240 = vmatpush3.bf16.msra.mxu1 %v5086_v44 }
 0x1c3   :  { %4242 = vmatprep.subr.bf16.mxu1 %v5855_v12 }
 0x1c6   :  { %4244 = vmatpush3.bf16.msra.mxu1 %v5856_v55 }
 0x1c7   :  { %4246 = vmatprep.subr.bf16.mxu1 %v5857_v0 }
 0x1ca   :  { %4248 = vmatpush3.bf16.msra.mxu1 %v5858_v36 }
 0x1cb   :  { %4250 = vmatprep.subr.bf16.mxu1 %v5859_v32 }
 0x1ce   :  { %4252 = vmatpush3.bf16.msra.mxu1 %v5860_v26 }
 0x1cf   :  { %4286 = vmatprep.subr.bf16.mxu1 %v4812_v54 }
 0x1d1   :  { %1000 = vmatmul.mubr.f32.vlgmr.msra.gmra.mrb[4].mxu1 %v519_v56 }
 0x1d2   :  { %4288 = vmatpush3.bf16.msra.mxu1 %v4924_v53  ;;  %1270 = vmatprep.mubr.f32.mxu1 %v5316_v24 }
 0x1d3   :  { %4290 = vmatprep.subr.bf16.mxu1 %v4957_v17 }
 0x1d6   :  { %4292 = vmatpush3.bf16.msra.mxu1 %v4959_v18 }
 0x1d7   :  { %4294 = vmatprep.subr.bf16.mxu1 %v4961_v19 }
 0x1da   :  { %4296 = vmatpush3.bf16.msra.mxu1 %v5006_v43 }
 0x1db   :  { %4298 = vmatprep.subr.bf16.mxu1 %v5043_v31 }
 0x1de   :  { %4300 = vmatpush3.bf16.msra.mxu1 %v5050_v45 }
 0x1df   :  { %4302 = vmatprep.subr.bf16.mxu1 %v5079_v59 }
 0x1e2   :  { %4304 = vmatpush3.bf16.msra.mxu1 %v5086_v44 }
 0x1e3   :  { %4306 = vmatprep.subr.bf16.mxu1 %v5855_v12 }
 0x1e6   :  { %4308 = vmatpush3.bf16.msra.mxu1 %v5856_v55 }
 0x1e7   :  { %4310 = vmatprep.subr.bf16.mxu1 %v5857_v0 }
 0x1ea   :  { %4312 = vmatpush3.bf16.msra.mxu1 %v5858_v36 }
 0x1eb   :  { %4314 = vmatprep.subr.bf16.mxu1 %v5859_v32 }
 0x1ee   :  { %4316 = vmatpush3.bf16.msra.mxu1 %v5860_v26 }
 0x1f1   :  { %1272 = vmatmul.mubr.f32.vlgmr.msra.gmra.mrb[6].mxu1 %v5311_v39 }
 0x25e   :  { %v3665_v1 = vpop.f32.mrb[8].mxu0 }
 0x25f   :  { %v3666_v6 = vpop.f32.mrb[9].mxu0 }
 0x260   :  { %v3667_v38 = vadd.f32 %v3666_v6, %v3665_v1 }
 0x264   :  { %v3595_v37 = vpop.f32.mrb[0].mxu1 }
 0x265   :  { %v3596_v24 = vpop.f32.mrb[1].mxu1 }
 0x266   :  { %v3597_v58 = vadd.f32 %v3596_v24, %v3595_v37 }
 0x27e   :  { %v3735_v56 = vpop.f32.mrb[10].mxu0 }
 0x27f   :  { %v3736_v30 = vpop.f32.mrb[11].mxu0 }
 0x280   :  { %v3737_v15 = vadd.f32 %v3736_v30, %v3735_v56  ;;  %v4614_v30 = vmov 1966171168  }
 0x284   :  { %v3630_v7 = vpop.f32.mrb[2].mxu1 }
 0x285   :  { %v3631_v34 = vpop.f32.mrb[3].mxu1 }
 0x286   :  { %v3632_v61 = vadd.f32 %v3631_v34, %v3630_v7  ;;  %v4587_v7 = vld [vmem:[%s5743_s6 + $0x8] sm:$0xff]   ;;  %v4589_v34 = vld [vmem:[%s5743_s6 + $0x50] sm:$0xff]  }
 0x288   :  { %v756_v60 = vadd.f32 %v3632_v61, %v3597_v58  ;;  %v1289_v58 = vunpack.c.l.s4 %v4614_v30  ;;  %v4590_v61 = vld [vmem:[%s5743_s6 + $0x10] sm:$0xff]   ;;  %v1306_v30 = vld [vmem:[%s5745_s5] sm:$0x1] }
 0x28a   :  { %v894_v14 = vadd.f32 %v3667_v38, %v756_v60  ;;  %v1290_v60 = vunpack.c.0.s8 %v1289_v58  ;;  %v5861_v38 = vld [vmem:[#allocation2_spill] sm:$0xff] }
 0x28b   :  { %v5438_v58 = vsub.s32 0, %v5861_v38 }
 0x28d   :  { %5863 = vst [vmem:[#allocation26_spill] sm:$0xff] %v5438_v58 }
 0x2a4   :  { %v3700_v20 = vpop.f32.mrb[4].mxu1 }
 0x2a5   :  { %v3701_v4 = vpop.f32.mrb[5].mxu1 }
 0x2a6   :  { %v3702_v62 = vadd.f32 %v3701_v4, %v3700_v20  ;;  %v5392_v4 = vsub.s32 %v1290_v60, %v5861_v38  ;;  %v4583_v20 = vld [vmem:[%s5743_s6 + $0x40] sm:$0xff]  }
 0x2a7   :  { %3785 = vmatprep.subr.bf16.mxu1 %v4583_v20 }
 0x2a8   :  { %v1002_v47 = vadd.f32 %v3702_v62, %v894_v14  ;;  %5862 = vst [vmem:[#allocation25_spill] sm:$0xff] %v5392_v4  ;;  %v4584_v14 = vld [vmem:[%s5743_s6] sm:$0xff]  }
 0x2a9   :  { %3786 = vmatpush3.bf16.msra.mxu1 %v4584_v14 }
 0x2aa   :  { %v1170_v48 = vadd.f32 %v3737_v15, %v1002_v47  ;;  %v4586_v15 = vld [vmem:[%s5743_s6 + $0x48] sm:$0xff]  }
 0x2ab   :  { %3787 = vmatprep.subr.bf16.mxu1 %v4586_v15 }
 0x2ad   :  { %3788 = vmatpush3.bf16.msra.mxu1 %v4587_v7 }
 0x2ae   :  { %3789 = vmatprep.subr.bf16.mxu1 %v4589_v34 }
 0x2b1   :  { %3790 = vmatpush3.bf16.msra.mxu1 %v4590_v61 }
 0x2c4   :  { %v3770_v39 = vpop.f32.mrb[6].mxu1 }
 0x2c5   :  { %v3771_v16 = vpop.f32.mrb[7].mxu1 }
 0x2c6   :  { %v3772_v13 = vadd.f32 %v3771_v16, %v3770_v39  ;;  %v5799_v16 = vmov 0.0   ;;  %v4592_v39 = vld [vmem:[%s5743_s6 + $0x58] sm:$0xff]  }
 0x2c7   :  { %4045 = vmatprep.subr.mxu0 %v5799_v16  ;;  %4047 = vmatprep.mubr.msk.f32.mxu0 %vm4617_vm3, %v5799_v16 }
 0x2c8   :  { %v1274_v1 = vadd.f32 %v3772_v13, %v1170_v48  ;;  %3791 = vmatprep.subr.bf16.mxu1 %v4592_v39 }
 0x2ca   :  { %v1277_v6 = vmul.f32 0.001953125, %v1274_v1  ;;  %v4593_v1 = vld [vmem:[%s5743_s6 + $0x18] sm:$0xff]  }
 0x2cb   :  { %3792 = vmatpush3.bf16.msra.mxu1 %v4593_v1 }
 0x2cc   :  { %v1278_v9 = vmul.f32 %v1277_v6, %v1277_v6 }
 0x2ce   :  { %1280 = vrot.lane.b32.xlu0 %v1278_v9, %s4613_s9  ;;  %v1317_v9 = vld [vmem:[%s5742_s10] sm:$0xff] }
 0x2cf   :  { %v5401_v48 = vand.u32 4294901760, %v1317_v9 }
 0x2d1   :  { %4046 = vmatpush3.msra.mxu0 %v5401_v48 }
 0x2d2   :  { %4050 = vmatprep.subr.mxu0 %v5799_v16 }
 0x340   :  { %v1281_v37 = vpop.permute.xlu0 %1280 }
 0x341   :  { %v1283_v24 = vsub.f32 %v1277_v6, %v1281_v37  ;;  %v1284_v37 = vld [vmem:[%s5744_s4] sm:$0x1] }
 0x343   :  { %v1285_v56 = vadd.f32 1e-05, %v1283_v24 }
 0x345   :  { %4607 = vrsqrt.f32 %v1285_v56 }
 0x34f   :  { %v4608_v47 = vpop.eup %4607 }
 0x350   :  { %v1294_v62 = vrot.slane %v4608_v47, %v5392_v4 }
 0x352   :  { %v1301_v13 = vrot.slane %v1294_v62, %v5392_v4  ;;  %v5441_v62 = vsub.f32 %v1317_v9, %v5401_v48 }
 0x354   :  { %1302 = vrot.lane.b32.xlu1 %v1301_v13, %s4615_s30  ;;  %5864 = vst [vmem:[#allocation29_spill] sm:$0xff] %v5441_v62  ;;  %v5447_v15 = vand.u32 4294901760, %v5441_v62 }
 0x356   :  { %5865 = vst [vmem:[#allocation30_spill] sm:$0xff] %v5447_v15 }
 0x3c6   :  { %v1303_v24 = vpop.permute.xlu1 %1302 }
 0x3c7   :  { %v1305_v56 = vmul.f32 %v1303_v24, %v1284_v37  ;;  %v4585_v37 = vld [vmem:[%s5743_s6 + $0x80] sm:$0xff]   ;;  %v4588_v24 = vld [vmem:[%s5743_s6 + $0x88] sm:$0xff]  }
 0x3c9   :  { %v1307_v60 = vmul.f32 %v1305_v56, %v1277_v6  ;;  %v1402_v6 = vsub.f32 %v5441_v62, %v5447_v15 }
 0x3cb   :  { %v1308_v47 = vsub.f32 %v1306_v30, %v1307_v60  ;;  %v5451_v1 = vand.u32 4294901760, %v1402_v6  ;;  %v4594_v30 = vld [vmem:[%s5743_s6 + $0x98] sm:$0xff]   ;;  %v4595_v60 = vld [vmem:[%s5743_s6 + $0x60] sm:$0xff]   ;;  %v4602_v6 = vld [vmem:[%s5743_s6 + $0x30] sm:$0xff]  }
 0x3cc   :  { %3793 = vmatprep.subr.bf16.mxu1 %v4595_v60 }
 0x3cd   :  { %v1313_v13 = vrot.slane %v1308_v47, %v5438_v58  ;;  %5866 = vst [vmem:[#allocation31_spill] sm:$0xff] %v5451_v1  ;;  %v4596_v47 = vld [vmem:[%s5743_s6 + $0x20] sm:$0xff]  }
 0x3ce   :  { %3794 = vmatpush3.bf16.msra.mxu1 %v4596_v47 }
 0x3cf   :  { %v1316_v20 = vsel %vm1315_vm4, %v1305_v56, %v1313_v13  ;;  %v4591_v56 = vld [vmem:[%s5743_s6 + $0x90] sm:$0xff]   ;;  %v4597_v13 = vld [vmem:[%s5743_s6 + $0xa0] sm:$0xff]  }
 0x3d0   :  { %v1320_v14 = vsel %vm1318_vm5, %v1316_v20, 0  ;;  %v4598_v20 = vld [vmem:[%s5743_s6 + $0x68] sm:$0xff]  }
 0x3d1   :  { %v1388_v7 = vand.u32 4294901760, %v1320_v14  ;;  %3795 = vmatprep.subr.bf16.mxu1 %v4598_v20 }
 0x3d3   :  { %v1389_v34 = vsub.f32 %v1320_v14, %v1388_v7  ;;  %v4599_v14 = vld [vmem:[%s5743_s6 + $0x28] sm:$0xff]  }
 0x3d4   :  { %3796 = vmatpush3.bf16.msra.mxu1 %v4599_v14 }
 0x3d5   :  { %v1390_v61 = vand.u32 4294901760, %v1389_v34 }
 0x3d7   :  { %v1391_v39 = vsub.f32 %v1389_v34, %v1390_v61 }
 0x3d9   :  { %v1392_v9 = vand.u32 4294901760, %v1391_v39  ;;  %v4604_v39 = vld [vmem:[%s5743_s6 + $0x78] sm:$0xff]  }
 0x3db   :  { %4048 = vmatmul.mubr.f32.vlgmr.msra.gmra.mrb[12].mxu0 %v1392_v9  ;;  %v4605_v9 = vld [vmem:[%s5743_s6 + $0x38] sm:$0xff]  }
 0x3dc   :  { %4051 = vmatpush3.msra.mxu0 %v5451_v1  ;;  %4052 = vmatprep.mubr.msk.f32.mxu0 %vm4617_vm3, %v5799_v16 }
 0x3dd   :  { %4055 = vmatprep.subr.mxu0 %v5799_v16 }
 0x3e3   :  { %4053 = vmatmul.mubr.f32.vlgmr.msra.gmra.mrb[12].mxu0 %v1388_v7 }
 0x3e4   :  { %4056 = vmatpush3.msra.mxu0 %v5441_v62  ;;  %4057 = vmatprep.mubr.msk.f32.mxu0 %vm4617_vm3, %v5799_v16 }
 0x3e5   :  { %4060 = vmatprep.subr.mxu0 %v5799_v16 }
 0x3eb   :  { %4058 = vmatmul.mubr.f32.vlgmr.msra.gmra.mrb[12].mxu0 %v1389_v34  ;;  %v4601_v34 = vld [vmem:[%s5743_s6 + $0x70] sm:$0xff]  }
 0x3ec   :  { %4061 = vmatpush3.msra.mxu0 %v5401_v48  ;;  %4062 = vmatprep.mubr.msk.f32.mxu0 %vm4617_vm3, %v5799_v16 }
 0x3ed   :  { %4065 = vmatprep.subr.mxu0 %v5799_v16  ;;  %3797 = vmatprep.subr.bf16.mxu1 %v4601_v34 }
 0x3ee   :  { %3798 = vmatpush3.bf16.msra.mxu1 %v4602_v6 }
 0x3ef   :  { %3799 = vmatprep.subr.bf16.mxu1 %v4604_v39 }
 0x3f2   :  { %3800 = vmatpush3.bf16.msra.mxu1 %v4605_v9 }
 0x3f3   :  { %4063 = vmatmul.mubr.f32.vlgmr.msra.gmra.mrb[12].mxu0 %v1390_v61  ;;  %v4603_v61 = vld [vmem:[%s5743_s6 + $0xb0] sm:$0xff]   ;;  %4318 = vmatprep.subr.bf16.mxu1 %v4812_v54 }
 0x3f4   :  { %4066 = vmatpush3.msra.mxu0 %v5447_v15  ;;  %4067 = vmatprep.mubr.msk.f32.mxu0 %vm4617_vm3, %v5799_v16 }
 0x3f5   :  { %4070 = vmatprep.subr.mxu0 %v5799_v16 }
 0x3fb   :  { %4068 = vmatmul.mubr.f32.vlgmr.msra.gmra.mrb[12].mxu0 %v1388_v7 }
 0x3fc   :  { %4071 = vmatpush3.msra.mxu0 %v5401_v48  ;;  %4072 = vmatprep.mubr.msk.f32.mxu0 %vm4617_vm3, %v5799_v16 }
 0x3fd   :  { %4075 = vmatprep.subr.bf16.mxu0 %v4585_v37 }
 0x403   :  { %4073 = vmatmul.mubr.f32.vlgmr.msra.gmra.mrb[12].mxu0 %v1388_v7  ;;  %v4600_v7 = vld [vmem:[%s5743_s6 + $0xa8] sm:$0xff]  }
 0x404   :  { %4076 = vmatpush3.bf16.msra.mxu0 %v4585_v37  ;;  %v4606_v37 = vld [vmem:[%s5743_s6 + $0xb8] sm:$0xff]  }
 0x405   :  { %4077 = vmatprep.subr.bf16.mxu0 %v4588_v24 }
 0x408   :  { %4078 = vmatpush3.bf16.msra.mxu0 %v4588_v24  ;;  %v5867_v24 = vld [vmem:[#allocation34_spill] sm:$0xff] }
 0x409   :  { %4079 = vmatprep.subr.bf16.mxu0 %v4591_v56 }
 0x40c   :  { %4080 = vmatpush3.bf16.msra.mxu0 %v4591_v56  ;;  %v5805_v56 = vsub.s32 1, %v5861_v38 }
 0x40d   :  { %4081 = vmatprep.subr.bf16.mxu0 %v4594_v30 }
 0x410   :  { %4082 = vmatpush3.bf16.msra.mxu0 %v4594_v30 }
 0x411   :  { %4083 = vmatprep.subr.bf16.mxu0 %v4597_v13 }
 0x414   :  { %4084 = vmatpush3.bf16.msra.mxu0 %v4597_v13 }
 0x415   :  { %4085 = vmatprep.subr.bf16.mxu0 %v4600_v7 }
 0x418   :  { %4086 = vmatpush3.bf16.msra.mxu0 %v4600_v7 }
 0x419   :  { %4087 = vmatprep.subr.bf16.mxu0 %v4603_v61 }
 0x41c   :  { %4088 = vmatpush3.bf16.msra.mxu0 %v4603_v61 }
 0x41d   :  { %4089 = vmatprep.subr.bf16.mxu0 %v4606_v37 }
 0x420   :  { %4090 = vmatpush3.bf16.msra.mxu0 %v4606_v37 }
 0x421   :  { %4350 = vmatprep.subr.bf16.mxu0 %v5867_v24 }
 0x4d6   :  { %v1764_v30 = vpop.f32.mrb[12].mxu0 }
 0x4d7   :  { %v1771_v60 = vrot.slane %v1764_v30, %v5438_v58  ;;  %v4074_v47 = vpop.f32.mrb[13].mxu0  ;;  %v1779_v13 = vrot.slane %v1764_v30, %v5805_v56 }
 0x4d9   :  { %v1772_v20 = vmul.f32 %v1771_v60, %v5283_v11  ;;  %v1773_v14 = vmul.f32 %v1771_v60, %v5287_v8  ;;  %v1774_v7 = vmul.f32 %v1771_v60, %v5297_v40  ;;  %v1775_v34 = vmul.f32 %v1771_v60, %v5304_v51 }
 0x4db   :  { %v1782_v6 = vadd.f32 %v1779_v13, %v1774_v7  ;;  %v1783_v61 = vadd.f32 %v1779_v13, %v1775_v34  ;;  %v1780_v39 = vadd.f32 %v1779_v13, %v1772_v20  ;;  %v1781_v9 = vadd.f32 %v1779_v13, %v1773_v14  ;;  %v5868_v20 = vld [vmem:[#allocation5_spill] sm:$0xff]  ;;  %v5869_v7 = vld [vmem:[#allocation7_spill] sm:$0xff] }
 0x4dd   :  { %v1786_v37 = vmax.f32 %v1782_v6, 0.0  ;;  %v1787_v24 = vmax.f32 %v1783_v61, 0.0  ;;  %v1784_v16 = vmax.f32 %v1780_v39, 0.0  ;;  %v1785_v15 = vmax.f32 %v1781_v9, 0.0  ;;  %v5871_v39 = vld [vmem:[#allocation6_spill] sm:$0xff] }
 0x4df   :  { %v1791_v47 = vrot.slane %v1787_v24, 7  ;;  %v1803_v1 = vrot.slane %v1787_v24, 1  ;;  %v1788_v58 = vrot.slane %v1784_v16, 7  ;;  %v1789_v30 = vrot.slane %v1785_v15, 7 }
 0x4e0   :  { %v1813_v56 = vpack.c.bf16 %v1785_v15, %v1784_v16  ;;  %v1800_v11 = vrot.slane %v1784_v16, 1  ;;  %v1801_v4 = vrot.slane %v1785_v15, 1  ;;  %v1802_v8 = vrot.slane %v1786_v37, 1  ;;  %v5870_v15 = vld [vmem:[#allocation4_spill] sm:$0xff] }
 0x4e1   :  { %v1794_v40 = vsel %vm60_vm1, %v1788_v58, %v1789_v30  ;;  %v1795_v51 = vsel %vm60_vm1, %v1791_v47, %v1788_v58  ;;  %v1816_v60 = vpack.c.bf16 %v1787_v24, %v1786_v37  ;;  %v1790_v13 = vrot.slane %v1786_v37, 7  ;;  %v5872_v24 = vld [vmem:[#allocation11_spill] sm:$0xff] }
 0x4e2   :  { %2042 = vmatprep.mubr.bf16.mxu1 %v1813_v56  ;;  %v1796_v14 = vmul.f32 %v1795_v51, %v5868_v20  ;;  %v1797_v34 = vmul.f32 %v1794_v40, %v5869_v7  ;;  %v1805_v6 = vsel %vm93_vm0, %v1801_v4, %v1802_v8  ;;  %v1806_v16 = vsel %vm93_vm0, %v1800_v11, %v1801_v4  ;;  %v5873_v40 = vld [vmem:[#allocation10_spill] sm:$0xff] }
 0x4e3   :  { %v1808_v61 = vmul.f32 %v1806_v16, %v5870_v15  ;;  %v1809_v9 = vmul.f32 %v1805_v6, %v5871_v39  ;;  %v1804_v58 = vsel %vm93_vm0, %v1802_v8, %v1803_v1  ;;  %v1807_v56 = vsel %vm93_vm0, %v1803_v1, %v1800_v11  ;;  %v5874_v16 = vld [vmem:[#allocation8_spill] sm:$0xff]  ;;  %v5875_v8 = vld [vmem:[#allocation9_spill] sm:$0xff] }
 0x4e4   :  { %v1812_v37 = vpack.c.bf16 %v1797_v34, %v1796_v14  ;;  %v1810_v51 = vmul.f32 %v1804_v58, %v5872_v24  ;;  %v1811_v20 = vmul.f32 %v1807_v56, %v5873_v40  ;;  %v1792_v7 = vsel %vm60_vm1, %v1790_v13, %v1791_v47 }
 0x4e5   :  { %v1814_v62 = vpack.c.bf16 %v1809_v9, %v1808_v61  ;;  %v1793_v4 = vsel %vm60_vm1, %v1789_v30, %v1790_v13  ;;  %v1799_v6 = vmul.f32 %v1792_v7, %v5874_v16 }
 0x4e6   :  { %2043 = vmatmul.mubr.bf16.vlgmr.msra.gmra.mrb[8].mxu1 %v1812_v37  ;;  %v1817_v15 = vpack.c.bf16 %v1811_v20, %v1810_v51  ;;  %v1798_v39 = vmul.f32 %v1793_v4, %v5875_v8 }
 0x4e7   :  { %4091 = vmatprep.mubr.bf16.mxu0 %v1814_v62  ;;  %2050 = vmatprep.mubr.bf16.mxu1 %v1816_v60 }
 0x4e8   :  { %4092 = vmatmul.mubr.bf16.vlgmr.msra.gmra.mrb[16].mxu0 %v1817_v15  ;;  %v1815_v1 = vpack.c.bf16 %v1799_v6, %v1798_v39  ;;  %4320 = vmatpush3.bf16.msra.mxu1 %v4924_v53 }
 0x4e9   :  { %4352 = vmatpush3.bf16.msra.mxu0 %v5179_v25  ;;  %4322 = vmatprep.subr.bf16.mxu1 %v4957_v17 }
 0x4ea   :  { %4354 = vmatprep.subr.bf16.mxu0 %v5193_v3  ;;  %v5876_v3 = vld [vmem:[#allocation3_spill] sm:$0xff] }
 0x4ec   :  { %4324 = vmatpush3.bf16.msra.mxu1 %v4959_v18 }
 0x4ed   :  { %4356 = vmatpush3.bf16.msra.mxu0 %v5198_v49  ;;  %4326 = vmatprep.subr.bf16.mxu1 %v4961_v19 }
 0x4ee   :  { %2051 = vmatmul.mubr.bf16.gmra.mrb[12].mxu1 %v1815_v1  ;;  %4358 = vmatprep.subr.bf16.mxu0 %v5212_v42 }
 0x4f0   :  { %4328 = vmatpush3.bf16.msra.mxu1 %v5006_v43 }
 0x4f1   :  { %4360 = vmatpush3.bf16.msra.mxu0 %v5218_v57  ;;  %4330 = vmatprep.subr.bf16.mxu1 %v5043_v31 }
 0x4f2   :  { %4362 = vmatprep.subr.bf16.mxu0 %v5228_v27 }
 0x4f4   :  { %4332 = vmatpush3.bf16.msra.mxu1 %v5050_v45 }
 0x4f5   :  { %4364 = vmatpush3.bf16.msra.mxu0 %v5234_v35  ;;  %4334 = vmatprep.subr.bf16.mxu1 %v5079_v59 }
 0x4f6   :  { %4366 = vmatprep.subr.bf16.mxu0 %v5244_v52 }
 0x4f8   :  { %4336 = vmatpush3.bf16.msra.mxu1 %v5086_v44 }
 0x4f9   :  { %4368 = vmatpush3.bf16.msra.mxu0 %v5250_v22  ;;  %4338 = vmatprep.subr.bf16.mxu1 %v5855_v12 }
 0x4fa   :  { %4370 = vmatprep.subr.bf16.mxu0 %v5260_v23 }
 0x4fc   :  { %4340 = vmatpush3.bf16.msra.mxu1 %v5856_v55 }
 0x4fd   :  { %4372 = vmatpush3.bf16.msra.mxu0 %v5266_v28  ;;  %4342 = vmatprep.subr.bf16.mxu1 %v5857_v0 }
 0x4fe   :  { %4374 = vmatprep.subr.bf16.mxu0 %v5275_v46 }
 0x500   :  { %4344 = vmatpush3.bf16.msra.mxu1 %v5858_v36 }
 0x501   :  { %4376 = vmatpush3.bf16.msra.mxu0 %v5277_v21  ;;  %4346 = vmatprep.subr.bf16.mxu1 %v5859_v32 }
 0x502   :  { %4378 = vmatprep.subr.bf16.mxu0 %v5279_v10 }
 0x504   :  { %4348 = vmatpush3.bf16.msra.mxu1 %v5860_v26 }
 0x505   :  { %4380 = vmatpush3.bf16.msra.mxu0 %v5281_v5  ;;  %4382 = vmatprep.subr.bf16.mxu1 %v5876_v3 }
 0x506   :  { %4414 = vmatprep.subr.bf16.mxu0 %v4812_v54 }
 0x5b9   :  { %v3801_v25 = vpop.f32.mrb[8].mxu1 }
 0x5ba   :  { %v3802_v49 = vpop.f32.mrb[9].mxu1 }
 0x5bb   :  { %v3803_v42 = vadd.f32 %v3802_v49, %v3801_v25  ;;  %v4093_v57 = vpop.f32.mrb[16].mxu0  ;;  %v3804_v27 = vpop.f32.mrb[10].mxu1 }
 0x5bc   :  { %v2093_v35 = vpop.f32.mrb[17].mxu0  ;;  %v3805_v52 = vpop.f32.mrb[11].mxu1 }
 0x5bd   :  { %v5586_v22 = vadd.f32 %v3803_v42, %v2093_v35  ;;  %v3806_v23 = vadd.f32 %v3805_v52, %v3804_v27  ;;  %v4094_v28 = vpop.f32.mrb[18].mxu0 }
 0x5be   :  { %v2096_v46 = vpop.f32.mrb[19].mxu0 }
 0x5bf   :  { %v5588_v21 = vadd.f32 %v3806_v23, %v2096_v46  ;;  %v2108_v60 = vmul.f32 %v5586_v22, %v5586_v22 }
 0x5c1   :  { %v3807_v10 = vpop.f32.mrb[12].mxu1  ;;  %v2109_v62 = vmul.f32 %v5588_v21, %v5588_v21  ;;  %v2112_v13 = vadd.f32 %v5588_v21, %v5586_v22 }
 0x5c2   :  { %v3808_v5 = vpop.f32.mrb[13].mxu1 }
 0x5c3   :  { %v3809_v47 = vadd.f32 %v3808_v5, %v3807_v10  ;;  %v3810_v30 = vpop.f32.mrb[14].mxu1  ;;  %v2121_v61 = vadd.f32 %v2109_v62, %v2108_v60  ;;  %v5877_v62 = vld [vmem:[#allocation12_spill] sm:$0xff] }
 0x5c4   :  { %v3811_v11 = vpop.f32.mrb[15].mxu1  ;;  %v5881_v60 = vld [vmem:[#allocation16_spill] sm:$0xff] }
 0x5c5   :  { %v5596_v14 = vadd.f32 %v4093_v57, %v3809_v47  ;;  %v3812_v34 = vadd.f32 %v3811_v11, %v3810_v30  ;;  %v5878_v47 = vld [vmem:[#allocation13_spill] sm:$0xff]  ;;  %v5879_v30 = vld [vmem:[#allocation14_spill] sm:$0xff]  ;;  %v5880_v11 = vld [vmem:[#allocation15_spill] sm:$0xff] }
 0x5c7   :  { %v2110_v9 = vmul.f32 %v5596_v14, %v5596_v14  ;;  %v2113_v58 = vadd.f32 %v2112_v13, %v5596_v14  ;;  %v5601_v56 = vadd.f32 %v4094_v28, %v3812_v34  ;;  %v5882_v13 = vld [vmem:[#allocation17_spill] sm:$0xff]  ;;  %v5883_v34 = vld [vmem:[#allocation18_spill] sm:$0xff] }
 0x5c9   :  { %v2122_v37 = vadd.f32 %v2121_v61, %v2110_v9  ;;  %v2111_v24 = vmul.f32 %v5601_v56, %v5601_v56  ;;  %v2114_v51 = vadd.f32 %v2113_v58, %v5601_v56  ;;  %v5884_v61 = vld [vmem:[#allocation19_spill] sm:$0xff]  ;;  %v5885_v9 = vld [vmem:[#allocation20_spill] sm:$0xff]  ;;  %v5886_v58 = vld [vmem:[#allocation21_spill] sm:$0xff] }
 0x5cb   :  { %v2115_v40 = vrot.slane %v2114_v51, 4  ;;  %v2123_v20 = vadd.f32 %v2122_v37, %v2111_v24  ;;  %v5887_v37 = vld [vmem:[#allocation22_spill] sm:$0xff]  ;;  %v5888_v24 = vld [vmem:[#allocation23_spill] sm:$0xff] }
 0x5cd   :  { %v2116_v7 = vadd.f32 %v2115_v40, %v2114_v51  ;;  %v2124_v4 = vrot.slane %v2123_v20, 4  ;;  %v5889_v51 = vld [vmem:[#allocation24_spill] sm:$0xff]  ;;  %v5890_v40 = vld [vmem:[#allocation27_spill] sm:$0xff] }
 0x5cf   :  { %v2117_v16 = vrot.slane %v2116_v7, 2  ;;  %v2125_v6 = vadd.f32 %v2124_v4, %v2123_v20  ;;  %v5891_v20 = vld [vmem:[#allocation28_spill] sm:$0xff] }
 0x5d1   :  { %v2118_v15 = vadd.f32 %v2117_v16, %v2116_v7  ;;  %v2126_v8 = vrot.slane %v2125_v6, 2  ;;  %v5892_v7 = vld [vmem:[#allocation33_spill] sm:$0xff] }
 0x5d3   :  { %v2127_v39 = vadd.f32 %v2126_v8, %v2125_v6  ;;  %v2119_v1 = vrot.slane %v2118_v15, 1 }
 0x5d5   :  { %v2128_v3 = vrot.slane %v2127_v39, 1  ;;  %v2120_v25 = vadd.f32 %v2119_v1, %v2118_v15 }
 0x5d7   :  { %v2129_v49 = vadd.f32 %v2128_v3, %v2127_v39  ;;  %v5606_v42 = vand.u32 4294901760, %v2120_v25 }
 0x5d9   :  { %v2226_v57 = vand.u32 4294901760, %v2129_v49  ;;  %v2233_v27 = vsub.f32 %v2120_v25, %v5606_v42 }
 0x5db   :  { %2467 = vmatprep.mubr.f32.mxu0 %v2226_v57  ;;  %v2227_v35 = vsub.f32 %v2129_v49, %v2226_v57  ;;  %v2234_v52 = vand.u32 4294901760, %v2233_v27 }
 0x5dc   :  { %2469 = vmatmul.mubr.f32.vlgmr.msra.gmra.mrb[14].mxu0 %v5606_v42 }
 0x5dd   :  { %4416 = vmatpush3.bf16.msra.mxu0 %v4924_v53  ;;  %v2228_v23 = vand.u32 4294901760, %v2227_v35  ;;  %v2235_v28 = vsub.f32 %v2233_v27, %v2234_v52 }
 0x5de   :  { %4418 = vmatprep.subr.bf16.mxu0 %v4957_v17 }
 0x5df   :  { %2711 = vmatprep.mubr.f32.mxu0 %v2228_v23  ;;  %v2229_v46 = vsub.f32 %v2227_v35, %v2228_v23  ;;  %v2236_v5 = vand.u32 4294901760, %v2235_v28 }
 0x5e1   :  { %4420 = vmatpush3.bf16.msra.mxu0 %v4959_v18  ;;  %v2230_v10 = vand.u32 4294901760, %v2229_v46 }
 0x5e2   :  { %4422 = vmatprep.subr.bf16.mxu0 %v4961_v19 }
 0x5e3   :  { %2231 = vmatprep.mubr.f32.mxu1 %v2230_v10  ;;  %v5904_v10 = vld [vmem:[#allocation25_spill] sm:$0xff] }
 0x5e4   :  { %2237 = vmatmul.mubr.f32.vlgmr.msra.gmra.mrb[16].mxu1 %v2236_v5 }
 0x5e5   :  { %4384 = vmatpush3.bf16.msra.mxu1 %v5877_v62  ;;  %4424 = vmatpush3.bf16.msra.mxu0 %v5006_v43 }
 0x5e6   :  { %2604 = vmatprep.mubr.f32.mxu1 %v2227_v35  ;;  %4386 = vmatprep.subr.bf16.mxu1 %v5878_v47  ;;  %v2999_v47 = vld [vmem:[%s5746_s7] sm:$0x1] }
 0x5e7   :  { %4426 = vmatprep.subr.bf16.mxu0 %v5043_v31 }
 0x5e9   :  { %4388 = vmatpush3.bf16.msra.mxu1 %v5879_v30  ;;  %4428 = vmatpush3.bf16.msra.mxu0 %v5050_v45 }
 0x5ea   :  { %4390 = vmatprep.subr.bf16.mxu1 %v5880_v11  ;;  %4430 = vmatprep.subr.bf16.mxu0 %v5079_v59 }
 0x5ed   :  { %4392 = vmatpush3.bf16.msra.mxu1 %v5881_v60  ;;  %4432 = vmatpush3.bf16.msra.mxu0 %v5086_v44  ;;  %v3021_v60 = vld [vmem:[%s5747_s8] sm:$0x1] }
 0x5ee   :  { %4394 = vmatprep.subr.bf16.mxu1 %v5882_v13  ;;  %4434 = vmatprep.subr.bf16.mxu0 %v5855_v12 }
 0x5f1   :  { %4396 = vmatpush3.bf16.msra.mxu1 %v5883_v34  ;;  %4436 = vmatpush3.bf16.msra.mxu0 %v5856_v55 }
 0x5f2   :  { %4398 = vmatprep.subr.bf16.mxu1 %v5884_v61  ;;  %4438 = vmatprep.subr.bf16.mxu0 %v5857_v0  ;;  %v5905_v61 = vld [vmem:[#allocation26_spill] sm:$0xff] }
 0x5f5   :  { %4400 = vmatpush3.bf16.msra.mxu1 %v5885_v9  ;;  %4440 = vmatpush3.bf16.msra.mxu0 %v5858_v36 }
 0x5f6   :  { %4402 = vmatprep.subr.bf16.mxu1 %v5886_v58  ;;  %4442 = vmatprep.subr.bf16.mxu0 %v5859_v32 }
 0x5f9   :  { %4404 = vmatpush3.bf16.msra.mxu1 %v5887_v37  ;;  %4444 = vmatpush3.bf16.msra.mxu0 %v5860_v26 }
 0x5fa   :  { %4406 = vmatprep.subr.bf16.mxu1 %v5888_v24  ;;  %4478 = vmatprep.subr.bf16.mxu0 %v4812_v54  ;;  %v5893_v54 = vld [vmem:[#allocation35_spill] sm:$0xff] }
 0x5fc   :  { %2715 = vmatmul.mubr.f32.vlgmr.msra.gmra.mrb[20].mxu0 %v2234_v52 }
 0x5fd   :  { %4408 = vmatpush3.bf16.msra.mxu1 %v5889_v51  ;;  %4480 = vmatpush3.bf16.msra.mxu0 %v4924_v53  ;;  %v5895_v53 = vld [vmem:[#allocation37_spill] sm:$0xff] }
 0x5fe   :  { %2985 = vmatprep.mubr.f32.mxu0 %v2226_v57  ;;  %4410 = vmatprep.subr.bf16.mxu1 %v5890_v40 }
 0x5ff   :  { %4482 = vmatprep.subr.bf16.mxu0 %v4957_v17  ;;  %v5896_v17 = vld [vmem:[#allocation38_spill] sm:$0xff] }
 0x601   :  { %4412 = vmatpush3.bf16.msra.mxu1 %v5891_v20  ;;  %4484 = vmatpush3.bf16.msra.mxu0 %v4959_v18  ;;  %v5898_v18 = vld [vmem:[#allocation40_spill] sm:$0xff] }
 0x602   :  { %4446 = vmatprep.subr.bf16.mxu1 %v5892_v7  ;;  %4486 = vmatprep.subr.bf16.mxu0 %v4961_v19  ;;  %v5899_v19 = vmov 0.0  }
 0x604   :  { %2607 = vmatmul.mubr.f32.vlgmr.msra.gmra.mrb[18].mxu1 %v2233_v27 }
 0x605   :  { %4448 = vmatpush3.bf16.msra.mxu1 %v5157_v29  ;;  %2881 = vmatprep.mubr.f32.mxu1 %v2226_v57 }
 0x606   :  { %4488 = vmatpush3.bf16.msra.mxu0 %v5006_v43  ;;  %4450 = vmatprep.subr.bf16.mxu1 %v5170_v2  ;;  %v5894_v2 = vld [vmem:[#allocation36_spill] sm:$0xff]  ;;  %v5900_v43 = vld [vmem:[#allocation41_spill] sm:$0xff] }
 0x607   :  { %4490 = vmatprep.subr.bf16.mxu0 %v5043_v31  ;;  %v5903_v31 = vld [vmem:[#allocation29_spill] sm:$0xff] }
 0x609   :  { %4452 = vmatpush3.bf16.msra.mxu1 %v5172_v33 }
 0x60a   :  { %4492 = vmatpush3.bf16.msra.mxu0 %v5050_v45  ;;  %4454 = vmatprep.subr.bf16.mxu1 %v5185_v63  ;;  %v5901_v45 = vld [vmem:[#allocation42_spill] sm:$0xff] }
 0x60b   :  { %4494 = vmatprep.subr.bf16.mxu0 %v5079_v59  ;;  %v5902_v59 = vld [vmem:[#allocation43_spill] sm:$0xff] }
 0x60d   :  { %4456 = vmatpush3.bf16.msra.mxu1 %v5189_v41 }
 0x60e   :  { %4496 = vmatpush3.bf16.msra.mxu0 %v5086_v44  ;;  %4458 = vmatprep.subr.bf16.mxu1 %v5200_v50  ;;  %v5897_v44 = vld [vmem:[#allocation39_spill] sm:$0xff] }
 0x60f   :  { %4498 = vmatprep.subr.bf16.mxu0 %v5855_v12 }
 0x611   :  { %4460 = vmatpush3.bf16.msra.mxu1 %v5893_v54  ;;  %v5906_v54 = vld [vmem:[#allocation31_spill] sm:$0xff] }
 0x612   :  { %4500 = vmatpush3.bf16.msra.mxu0 %v5856_v55  ;;  %4462 = vmatprep.subr.bf16.mxu1 %v5894_v2  ;;  %v5907_v2 = vld [vmem:[#allocation30_spill] sm:$0xff] }
 0x613   :  { %4502 = vmatprep.subr.bf16.mxu0 %v5857_v0 }
 0x615   :  { %4464 = vmatpush3.bf16.msra.mxu1 %v5895_v53 }
 0x616   :  { %4504 = vmatpush3.bf16.msra.mxu0 %v5858_v36  ;;  %4466 = vmatprep.subr.bf16.mxu1 %v5896_v17 }
 0x617   :  { %4506 = vmatprep.subr.bf16.mxu0 %v5859_v32 }
 0x619   :  { %4468 = vmatpush3.bf16.msra.mxu1 %v5897_v44 }
 0x61a   :  { %4508 = vmatpush3.bf16.msra.mxu0 %v5860_v26  ;;  %4470 = vmatprep.subr.bf16.mxu1 %v5898_v18 }
 0x61b   :  { %4095 = vmatprep.subr.mxu0 %v5899_v19 }
 0x61d   :  { %2987 = vmatmul.mubr.f32.vlgmr.msra.gmra.mrb[22].mxu0 %v5606_v42  ;;  %4472 = vmatpush3.bf16.msra.mxu1 %v5900_v43 }
 0x61e   :  { %4474 = vmatprep.subr.bf16.mxu1 %v5901_v45  ;;  %4096 = vmatpush3.msra.mxu0 %v5401_v48  ;;  %v3538_v45 = vld [vmem:[%s5748_s11] ss:$0 sm:$0xff] }
 0x61f   :  { %4097 = vmatprep.mubr.msk.f32.mxu0 %vm4617_vm3, %v5899_v19  ;;  %4100 = vmatprep.subr.mxu0 %v5899_v19 }
 0x621   :  { %4476 = vmatpush3.bf16.msra.mxu1 %v5902_v59 }
 0x622   :  { %4105 = vmatprep.subr.mxu1 %v5899_v19 }
 0x624   :  { %2883 = vmatmul.mubr.f32.vlgmr.msra.gmra.mrb[20].mxu1 %v5606_v42 }
 0x625   :  { %4106 = vmatpush3.msra.mxu1 %v5903_v31  ;;  %4107 = vmatprep.mubr.msk.f32.mxu1 %vm4617_vm3, %v5899_v19  ;;  %v5908_v31 = vsub.s32 1, %v5861_v38 }
 0x626   :  { %4110 = vmatprep.subr.mxu1 %v5899_v19 }
 0x6af   :  { %v3890_v33 = vpop.f32.mrb[14].mxu0 }
 0x6b0   :  { %v3891_v29 = vpop.f32.mrb[15].mxu0 }
 0x6b1   :  { %v3892_v63 = vadd.f32 %v3891_v29, %v3890_v33 }
 0x6b7   :  { %v3855_v41 = vpop.f32.mrb[16].mxu1 }
 0x6b8   :  { %v3856_v50 = vpop.f32.mrb[17].mxu1 }
 0x6b9   :  { %v3857_v12 = vadd.f32 %v3856_v50, %v3855_v41  ;;  %v5909_v41 = vld [vmem:[#allocation44_spill] sm:$0xff] }
 0x6ba   :  { %v357_v50 = vadd.f32 %v3538_v45, %v5909_v41 }
 0x6bb   :  { %v2471_v55 = vadd.f32 %v3892_v63, %v3857_v12  ;;  %v5910_v12 = vld [vmem:[#allocation45_spill] sm:$0xff] }
 0x6cf   :  { %v3960_v0 = vpop.f32.mrb[20].mxu0 }
 0x6d0   :  { %v3961_v36 = vpop.f32.mrb[21].mxu0 }
 0x6d1   :  { %v3962_v32 = vadd.f32 %v3961_v36, %v3960_v0  ;;  %v5911_v0 = vld [vmem:[#allocation46_spill] sm:$0xff] }
 0x6d2   :  { %v359_v36 = vadd.f32 %v3538_v45, %v5911_v0 }
 0x6d7   :  { %v3925_v26 = vpop.f32.mrb[18].mxu1 }
 0x6d8   :  { %v3926_v4 = vpop.f32.mrb[19].mxu1 }
 0x6d9   :  { %v3927_v16 = vadd.f32 %v3926_v4, %v3925_v26 }
 0x6db   :  { %v2609_v6 = vadd.f32 %v3927_v16, %v2471_v55  ;;  %v358_v55 = vadd.f32 %v3538_v45, %v5910_v12 }
 0x6dd   :  { %v2717_v15 = vadd.f32 %v3962_v32, %v2609_v6  ;;  %v5912_v32 = vld [vmem:[#allocation47_spill] sm:$0xff] }
 0x6de   :  { %v360_v26 = vadd.f32 %v3538_v45, %v5912_v32 }
 0x6f0   :  { %v4030_v8 = vpop.f32.mrb[22].mxu0 }
 0x6f1   :  { %v4031_v39 = vpop.f32.mrb[23].mxu0 }
 0x6f2   :  { %v4032_v1 = vadd.f32 %v4031_v39, %v4030_v8 }
 0x6f7   :  { %v3995_v3 = vpop.f32.mrb[20].mxu1 }
 0x6f8   :  { %v3996_v25 = vpop.f32.mrb[21].mxu1 }
 0x6f9   :  { %v3997_v49 = vadd.f32 %v3996_v25, %v3995_v3 }
 0x6fb   :  { %v2885_v42 = vadd.f32 %v3997_v49, %v2717_v15 }
 0x6fd   :  { %v2989_v57 = vadd.f32 %v4032_v1, %v2885_v42 }
 0x6ff   :  { %v2992_v27 = vmul.f32 0.001953125, %v2989_v57 }
 0x701   :  { %v2993_v35 = vmul.f32 %v2992_v27, %v2992_v27 }
 0x703   :  { %2995 = vrot.lane.b32.xlu0 %v2993_v35, %s4613_s9 }
 0x775   :  { %v2996_v52 = vpop.permute.xlu0 %2995 }
 0x776   :  { %v2998_v23 = vsub.f32 %v2992_v27, %v2996_v52 }
 0x778   :  { %v3000_v28 = vadd.f32 1e-05, %v2998_v23 }
 0x77a   :  { %4609 = vrsqrt.f32 %v3000_v28 }
 0x784   :  { %v4610_v46 = vpop.eup %4609 }
 0x785   :  { %v3009_v5 = vrot.slane %v4610_v46, %v5904_v10 }
 0x787   :  { %v3016_v62 = vrot.slane %v3009_v5, %v5904_v10 }
 0x789   :  { %3017 = vrot.lane.b32.xlu1 %v3016_v62, %s4615_s30 }
 0x7fb   :  { %v3018_v30 = vpop.permute.xlu1 %3017 }
 0x7fc   :  { %v3020_v11 = vmul.f32 %v3018_v30, %v2999_v47 }
 0x7fe   :  { %v3022_v13 = vmul.f32 %v3020_v11, %v2992_v27 }
 0x800   :  { %v3023_v34 = vsub.f32 %v3021_v60, %v3022_v13 }
 0x802   :  { %v3028_v9 = vrot.slane %v3023_v34, %v5905_v61 }
 0x804   :  { %v3030_v58 = vsel %vm1315_vm4, %v3020_v11, %v3028_v9 }
 0x805   :  { %v3032_v37 = vsel %vm1318_vm5, %v3030_v58, 0 }
 0x806   :  { %v3100_v24 = vand.u32 4294901760, %v3032_v37 }
 0x808   :  { %v3101_v51 = vsub.f32 %v3032_v37, %v3100_v24 }
 0x80a   :  { %4108 = vmatmul.mubr.f32.vlgmr.msra.gmra.mrb[22].mxu1 %v3101_v51  ;;  %v3102_v40 = vand.u32 4294901760, %v3101_v51 }
 0x80b   :  { %4111 = vmatpush3.msra.mxu1 %v5401_v48  ;;  %4112 = vmatprep.mubr.msk.f32.mxu1 %vm4617_vm3, %v5899_v19 }
 0x80c   :  { %v3103_v20 = vsub.f32 %v3101_v51, %v3102_v40  ;;  %4115 = vmatprep.subr.mxu1 %v5899_v19 }
 0x80e   :  { %v3104_v7 = vand.u32 4294901760, %v3103_v20 }
 0x810   :  { %4098 = vmatmul.mubr.f32.vlgmr.msra.gmra.mrb[24].mxu0 %v3104_v7 }
 0x811   :  { %4101 = vmatpush3.msra.mxu0 %v5906_v54  ;;  %4102 = vmatprep.mubr.msk.f32.mxu0 %vm4617_vm3, %v5899_v19 }
 0x812   :  { %4113 = vmatmul.mubr.f32.vlgmr.msra.gmra.mrb[22].mxu1 %v3102_v40 }
 0x813   :  { %4116 = vmatpush3.msra.mxu1 %v5907_v2  ;;  %4117 = vmatprep.mubr.msk.f32.mxu1 %vm4617_vm3, %v5899_v19 }
 0x814   :  { %4120 = vmatprep.subr.mxu1 %v5899_v19 }
 0x818   :  { %4103 = vmatmul.mubr.f32.vlgmr.msra.gmra.mrb[24].mxu0 %v3100_v24 }
 0x81a   :  { %4118 = vmatmul.mubr.f32.vlgmr.msra.gmra.mrb[22].mxu1 %v3100_v24 }
 0x81b   :  { %4121 = vmatpush3.msra.mxu1 %v5401_v48  ;;  %4122 = vmatprep.mubr.msk.f32.mxu1 %vm4617_vm3, %v5899_v19 }
 0x822   :  { %4123 = vmatmul.mubr.f32.vlgmr.msra.gmra.mrb[22].mxu1 %v3100_v24 }
 0x8eb   :  { %v3182_v53 = vpop.f32.mrb[24].mxu0 }
 0x8ec   :  { %v4104_v17 = vpop.f32.mrb[25].mxu0 }
 0x8f5   :  { %v3476_v44 = vpop.f32.mrb[22].mxu1 }
 0x8f6   :  { %v4509_v18 = vadd.f32 %v3476_v44, %v3182_v53  ;;  %v4124_v43 = vpop.f32.mrb[23].mxu1 }
 0x8f8   :  { %v3483_v59 = vrot.slane %v4509_v18, %v5905_v61  ;;  %v3491_v33 = vrot.slane %v4509_v18, %v5908_v31 }
 0x8fa   :  { %v3484_v48 = vmul.f32 %v3483_v59, %v5586_v22  ;;  %v3485_v29 = vmul.f32 %v3483_v59, %v5588_v21  ;;  %v3486_v19 = vmul.f32 %v3483_v59, %v5596_v14  ;;  %v3487_v63 = vmul.f32 %v3483_v59, %v5601_v56 }
 0x8fc   :  { %v3492_v4 = vadd.f32 %v3491_v33, %v3484_v48  ;;  %v3493_v16 = vadd.f32 %v3491_v33, %v3485_v29  ;;  %v3494_v38 = vadd.f32 %v3491_v33, %v3486_v19  ;;  %v3495_v6 = vadd.f32 %v3491_v33, %v3487_v63 }
 0x8fe   :  { %v3496_v15 = vadd.f32 %v3492_v4, %v357_v50  ;;  %v3497_v22 = vadd.f32 %v3493_v16, %v358_v55  ;;  %v3498_v8 = vadd.f32 %v3494_v38, %v359_v36  ;;  %v3499_v21 = vadd.f32 %v3495_v6, %v360_v26 }
 0x900   :  { %v3500_v39 = vmax.f32 %v3496_v15, 0.0  ;;  %v3501_v14 = vmax.f32 %v3497_v22, 0.0  ;;  %v3502_v1 = vmax.f32 %v3498_v8, 0.0  ;;  %v3503_v56 = vmax.f32 %v3499_v21, 0.0 }
 0x902   :  { %3504 = vst [vmem:[%s5749_s12] sm:$0xff] %v3500_v39  ;;  %3505 = vst [vmem:[%s5749_s12 + $0x8] sm:$0xff] %v3501_v14 }
 0x903   :  { %3506 = vst [vmem:[%s5749_s12 + $0x10] sm:$0xff] %v3502_v1  ;;  %3507 = vst [vmem:[%s5749_s12 + $0x18] sm:$0xff] %v3503_v56 }

</bundles_post_ra>
